<compile_context>
chip_gen: v6e
topology: v6e:2x2x1
jax: 0.10.0
libtpu: 0.0.40
codegen_flags: <defaults>
</compile_context>

<pallas_src>
import functools

import jax
import jax.numpy as jnp
from jax import lax
from jax.experimental import pallas as pl
from jax.experimental.pallas import tpu as pltpu


# ---------------------------------------------------------------------------
# Fused kernel: conv1+ReLU+maxpool -> conv2+ReLU -> conv3+ReLU
# ---------------------------------------------------------------------------
def _encoder_kernel(p1_ref, w1_ref, b1_ref, s2_ref, w2_ref, b2_ref,
                    s3_ref, w3_ref, b3_ref, o_ref):
    """One batch tile per grid step; all intermediates stay in VMEM/vregs.

    p1_ref: (NB, M1, 9*Cin)  stride-2 3x3 input patches (one row per pooled px)
    w1_ref: (4, 9*Cin, 16)   conv1 weights, one matrix per pool-window position
    s2_ref: (4, M2, M1)      constant 0/1 tap-selection matrices for conv2
    w2_ref: (4, 16, 32)      conv2 weights per 2x2 tap
    s3_ref: (4, M3, M2)      tap-selection matrices for conv3
    w3_ref: (4, 32, 64)      conv3 weights per 2x2 tap
    o_ref : (NB, M3, 64)     final ReLU(conv3) activations
    """
    nb = p1_ref.shape[0]
    cdt = p1_ref.dtype

    # Hoist all grid-invariant loads out of the per-image loop (JAX does not
    # CSE them).  These blocks have constant index_maps, so Pallas DMAs them
    # only once for the whole grid.
    w1 = [w1_ref[t] for t in range(4)]
    s2 = [s2_ref[t] for t in range(4)]
    w2 = [w2_ref[t] for t in range(4)]
    s3 = [s3_ref[t] for t in range(4)]
    w3 = [w3_ref[t] for t in range(4)]
    b1, b2, b3 = b1_ref[...], b2_ref[...], b3_ref[...]

    for img in range(nb):  # static unroll over the batch tile
        p1 = p1_ref[img]                                           # (M1, 9*Cin)

        # --- conv1 + ReLU + 2x2 max-pool (fused) ---------------------------
        # The 4 conv positions inside each pool window share the same patch
        # rows: 4 small matmuls + bias + ReLU, then an elementwise max.
        c1 = [jnp.maximum(
                  jnp.dot(p1, w1[t], preferred_element_type=jnp.float32) + b1,
                  0.0)
              for t in range(4)]
        pool = jnp.maximum(jnp.maximum(c1[0], c1[1]),
                           jnp.maximum(c1[2], c1[3])).astype(cdt)  # (M1, 16)

        # --- conv2 + ReLU ---------------------------------------------------
        acc2 = None
        for t in range(4):
            tap = jnp.dot(s2[t], pool,
                          preferred_element_type=jnp.float32).astype(cdt)
            d = jnp.dot(tap, w2[t], preferred_element_type=jnp.float32)
            acc2 = d if acc2 is None else acc2 + d
        c2 = jnp.maximum(acc2 + b2, 0.0).astype(cdt)               # (M2, 32)

        # --- conv3 + ReLU ---------------------------------------------------
        acc3 = None
        for t in range(4):
            tap = jnp.dot(s3[t], c2,
                          preferred_element_type=jnp.float32).astype(cdt)
            d = jnp.dot(tap, w3[t], preferred_element_type=jnp.float32)
            acc3 = d if acc3 is None else acc3 + d
        c3 = jnp.maximum(acc3 + b3, 0.0)                           # (M3, 64)

        o_ref[img] = c3.astype(o_ref.dtype)


# ---------------------------------------------------------------------------
# Wrapper-side constant / layout construction (cheap XLA glue, computed once)
# ---------------------------------------------------------------------------
def _pool_patches(x_nhwc):
    """(N,H,W,C) -> (N, Hp*Wp, 9*C): stride-2, 3x3 receptive-field patches of
    the fused Conv2d(2x2)+MaxPool2d(2x2) stage.  Patch index = a*3C + b*C + c."""
    N, H, W, C = x_nhwc.shape
    Hp, Wp = (H - 1) // 2, (W - 1) // 2
    taps = [x_nhwc[:, a:a + 2 * Hp:2, b:b + 2 * Wp:2, :]
            for a in range(3) for b in range(3)]
    p = jnp.concatenate(taps, axis=-1)                 # (N, Hp, Wp, 9*C)
    return p.reshape(N, Hp * Wp, 9 * C)


def _conv1_pool_weights(w_oihw, dtype):
    """(Co,Ci,2,2) -> (4, 9*Ci, Co): one matrix per pool-window conv position
    t=(dh,dw); row index a*3Ci + b*Ci + c matches _pool_patches ordering."""
    co, ci, _, _ = w_oihw.shape
    mats = []
    for dh in range(2):
        for dw in range(2):
            m = jnp.zeros((9 * ci, co), dtype)
            for kh in range(2):
                for kw in range(2):
                    a, b = dh + kh, dw + kw
                    r = a * 3 * ci + b * ci
                    m = m.at[r:r + ci, :].set(
                        jnp.transpose(w_oihw[:, :, kh, kw]).astype(dtype))
            mats.append(m)
    return jnp.stack(mats)                              # (4, 9*Ci, Co)


def _conv_weights(w_oihw, dtype):
    """(Co,Ci,2,2) -> (4, Ci, Co), tap order t = dh*2 + dw."""
    return jnp.stack([jnp.transpose(w_oihw[:, :, dh, dw]).astype(dtype)
                      for dh in range(2) for dw in range(2)])


def _select_mats(Hi, Wi, dtype):
    """Constant 0/1 matrices (4, Ho*Wo, Hi*Wi) selecting the 4 taps of a 2x2
    valid conv on an (Hi,Wi,C) map stored row-major as (Hi*Wi, C)."""
    Ho, Wo = Hi - 1, Wi - 1
    rows = jnp.arange(Ho * Wo)
    i, j = rows // Wo, rows % Wo
    cols_all = jnp.arange(Hi * Wi)
    mats = []
    for dh in range(2):
        for dw in range(2):
            cols = (i + dh) * Wi + (j + dw)
            mats.append((cols[:, None] == cols_all[None, :]).astype(dtype))
    return jnp.stack(mats)                              # (4, Ho*Wo, Hi*Wi)


# ---------------------------------------------------------------------------
# ConvEncoder forward
# ---------------------------------------------------------------------------
@functools.partial(jax.jit, static_argnames=("batch_tile", "compute_dtype"))
def conv_encoder_forward(params, obs_nchw, *, batch_tile=8,
                         compute_dtype=jnp.float32):
    """obs: (N, 3, H, W) -> (N, 64, H', W') NCHW, matching PyTorch."""
    N, Cin, H, W = obs_nchw.shape
    Hp, Wp = (H - 1) // 2, (W - 1) // 2          # after conv1 + pool
    H2, W2 = Hp - 1, Wp - 1                      # after conv2
    H3, W3 = H2 - 1, W2 - 1                      # after conv3
    M1, M2, M3 = Hp * Wp, H2 * W2, H3 * W3
    K1 = 9 * Cin

    x = jnp.transpose(obs_nchw, (0, 2, 3, 1))                   # NHWC
    p1 = _pool_patches(x).astype(compute_dtype)                 # (N, M1, K1)

    # Batch tiling (pad to a multiple of the tile; padded images are discarded).
    nb = max(1, min(batch_tile, N))
    n_tiles = pl.cdiv(N, nb)
    n_pad = n_tiles * nb - N
    if n_pad:
        p1 = jnp.pad(p1, ((0, n_pad), (0, 0), (0, 0)))

    w1c, b1 = params["conv1"]
    w2c, b2 = params["conv2"]
    w3c, b3 = params["conv3"]
    w1s = _conv1_pool_weights(w1c, compute_dtype)               # (4, K1, 16)
    w2s = _conv_weights(w2c, compute_dtype)                     # (4, 16, 32)
    w3s = _conv_weights(w3c, compute_dtype)                     # (4, 32, 64)
    s2 = _select_mats(Hp, Wp, compute_dtype)                    # (4, M2, M1)
    s3 = _select_mats(H2, W2, compute_dtype)                    # (4, M3, M2)
    b1r = b1.reshape(1, -1).astype(compute_dtype)
    b2r = b2.reshape(1, -1).astype(compute_dtype)
    b3r = b3.reshape(1, -1).astype(compute_dtype)

    def _const_spec(*shape):
        # Grid-invariant block: fetched once, stays resident in VMEM.
        return pl.BlockSpec(shape, lambda n: (0,) * len(shape))

    out = pl.pallas_call(
        _encoder_kernel,
        out_shape=jax.ShapeDtypeStruct((N + n_pad, M3, 64), obs_nchw.dtype),
        grid=(n_tiles,),
        in_specs=[
            pl.BlockSpec((nb, M1, K1), lambda n: (n, 0, 0)),    # pipelined acts
            _const_spec(4, K1, 16),
            _const_spec(1, 16),
            _const_spec(4, M2, M1),
            _const_spec(4, 16, 32),
            _const_spec(1, 32),
            _const_spec(4, M3, M2),
            _const_spec(4, 32, 64),
            _const_spec(1, 64),
        ],
        out_specs=pl.BlockSpec((nb, M3, 64), lambda n: (n, 0, 0)),
        compiler_params=pltpu.CompilerParams(
            dimension_semantics=("parallel",),       # v7x: 2 TCs split tiles
            vmem_limit_bytes=32 * 1024 * 1024,
        ),
    )(p1, w1s, b1r, s2, w2s, b2r, s3, w3s, b3r)

    out = out[:N].reshape(N, H3, W3, 64)
    return jnp.transpose(out, (0, 3, 1, 2))                     # NHWC -> NCHW


# ---------------------------------------------------------------------------
# Deterministic parameter init (same shapes as the PyTorch module)
# ---------------------------------------------------------------------------
def init_params(key):
    def conv_params(k, cout, cin, kh, kw):
        k1, k2 = jax.random.split(k)
        bound = 1.0 / jnp.sqrt(cin * kh * kw)
        w = jax.random.uniform(k1, (cout, cin, kh, kw), jnp.float32, -bound, bound)
        b = jax.random.uniform(k2, (cout,), jnp.float32, -bound, bound)
        return w, b

    k1, k2, k3 = jax.random.split(key, 3)
    return {
        "conv1": conv_params(k1, 16, 3, 2, 2),
        "conv2": conv_params(k2, 32, 16, 2, 2),
        "conv3": conv_params(k3, 64, 32, 2, 2),
    }


# ---------------------------------------------------------------------------
# Pure-JAX reference (for correctness check only)
# ---------------------------------------------------------------------------
def reference_forward(params, obs_nchw):
    x = jnp.transpose(obs_nchw, (0, 2, 3, 1))
    dn = ("NHWC", "HWIO", "NHWC")

    def conv(x, w_oihw, b):
        w = jnp.transpose(w_oihw, (2, 3, 1, 0))
        y = lax.conv_general_dilated(x, w, (1, 1), "VALID", dimension_numbers=dn)
        return jax.nn.relu(y + b)

    x = conv(x, *params["conv1"])
    x = lax.reduce_window(x, -jnp.inf, lax.max, (1, 2, 2, 1), (1, 2, 2, 1), "VALID")
    x = conv(x, *params["conv2"])
    x = conv(x, *params["conv3"])
    return jnp.transpose(x, (0, 3, 1, 2))


if __name__ == "__main__":
    key = jax.random.PRNGKey(0)
    pkey, xkey = jax.random.split(key)
    params = init_params(pkey)

    # batch=8: multi-step pipelined grid; batch=3: exercises the padding path.
    for batch in (8, 3):
        obs = jax.random.normal(jax.random.fold_in(xkey, batch),
                                (batch, 3, 16, 16), dtype=jnp.float32)
        out = jax.block_until_ready(
            conv_encoder_forward(params, obs, batch_tile=2))
        assert out.shape == (batch, 64, 5, 5), out.shape

        ref = jax.block_until_ready(reference_forward(params, obs))
        err = float(jnp.max(jnp.abs(out - ref)))
        assert jnp.allclose(out, ref, atol=1e-4, rtol=1e-4), err

    print("KERNEL_OK")
</pallas_src>

<mosaic_0001>
module attributes {stable_mosaic.version = 11 : i64} {
  func.func @_encoder_kernel(%arg0: i32, %arg1: memref<2x49x27xf32, #tpu.memory_space<vmem>>, %arg2: memref<4x27x16xf32, #tpu.memory_space<vmem>>, %arg3: memref<1x16xf32, #tpu.memory_space<vmem>>, %arg4: memref<4x36x49xf32, #tpu.memory_space<vmem>>, %arg5: memref<4x16x32xf32, #tpu.memory_space<vmem>>, %arg6: memref<1x32xf32, #tpu.memory_space<vmem>>, %arg7: memref<4x25x36xf32, #tpu.memory_space<vmem>>, %arg8: memref<4x32x64xf32, #tpu.memory_space<vmem>>, %arg9: memref<1x64xf32, #tpu.memory_space<vmem>>, %arg10: memref<2x25x64xf32, #tpu.memory_space<vmem>>) attributes {dimension_semantics = [#tpu.dimension_semantics<parallel>], iteration_bounds = array<i64: 4>, scalar_prefetch = 0 : i64, scratch_operands = 0 : i64, tpu.core_type = #tpu.core_type<tc>, window_params = [{transform_indices = @transform_0, window_bounds = array<i64: 2, 49, 27>}, {pipeline_mode = #tpu.pipeline_mode<synchronous>, transform_indices = @transform_1, window_bounds = array<i64: 4, 27, 16>}, {pipeline_mode = #tpu.pipeline_mode<synchronous>, transform_indices = @transform_2, window_bounds = array<i64: 1, 16>}, {pipeline_mode = #tpu.pipeline_mode<synchronous>, transform_indices = @transform_3, window_bounds = array<i64: 4, 36, 49>}, {pipeline_mode = #tpu.pipeline_mode<synchronous>, transform_indices = @transform_4, window_bounds = array<i64: 4, 16, 32>}, {pipeline_mode = #tpu.pipeline_mode<synchronous>, transform_indices = @transform_5, window_bounds = array<i64: 1, 32>}, {pipeline_mode = #tpu.pipeline_mode<synchronous>, transform_indices = @transform_6, window_bounds = array<i64: 4, 25, 36>}, {pipeline_mode = #tpu.pipeline_mode<synchronous>, transform_indices = @transform_7, window_bounds = array<i64: 4, 32, 64>}, {pipeline_mode = #tpu.pipeline_mode<synchronous>, transform_indices = @transform_8, window_bounds = array<i64: 1, 64>}, {transform_indices = @transform_9, window_bounds = array<i64: 2, 25, 64>}]} {
    %c0 = arith.constant 0 : index
    %c0_0 = arith.constant 0 : index
    %c0_1 = arith.constant 0 : index
    %0 = vector.load %arg2[%c0, %c0_0, %c0_1] : memref<4x27x16xf32, #tpu.memory_space<vmem>>, vector<1x27x16xf32>
    %1 = vector.shape_cast %0 : vector<1x27x16xf32> to vector<27x16xf32>
    %c1 = arith.constant 1 : index
    %c0_2 = arith.constant 0 : index
    %c0_3 = arith.constant 0 : index
    %2 = vector.load %arg2[%c1, %c0_2, %c0_3] : memref<4x27x16xf32, #tpu.memory_space<vmem>>, vector<1x27x16xf32>
    %3 = vector.shape_cast %2 : vector<1x27x16xf32> to vector<27x16xf32>
    %c2 = arith.constant 2 : index
    %c0_4 = arith.constant 0 : index
    %c0_5 = arith.constant 0 : index
    %4 = vector.load %arg2[%c2, %c0_4, %c0_5] : memref<4x27x16xf32, #tpu.memory_space<vmem>>, vector<1x27x16xf32>
    %5 = vector.shape_cast %4 : vector<1x27x16xf32> to vector<27x16xf32>
    %c3 = arith.constant 3 : index
    %c0_6 = arith.constant 0 : index
    %c0_7 = arith.constant 0 : index
    %6 = vector.load %arg2[%c3, %c0_6, %c0_7] : memref<4x27x16xf32, #tpu.memory_space<vmem>>, vector<1x27x16xf32>
    %7 = vector.shape_cast %6 : vector<1x27x16xf32> to vector<27x16xf32>
    %c0_8 = arith.constant 0 : index
    %c0_9 = arith.constant 0 : index
    %c0_10 = arith.constant 0 : index
    %8 = vector.load %arg4[%c0_8, %c0_9, %c0_10] : memref<4x36x49xf32, #tpu.memory_space<vmem>>, vector<1x36x49xf32>
    %9 = vector.shape_cast %8 : vector<1x36x49xf32> to vector<36x49xf32>
    %c1_11 = arith.constant 1 : index
    %c0_12 = arith.constant 0 : index
    %c0_13 = arith.constant 0 : index
    %10 = vector.load %arg4[%c1_11, %c0_12, %c0_13] : memref<4x36x49xf32, #tpu.memory_space<vmem>>, vector<1x36x49xf32>
    %11 = vector.shape_cast %10 : vector<1x36x49xf32> to vector<36x49xf32>
    %c2_14 = arith.constant 2 : index
    %c0_15 = arith.constant 0 : index
    %c0_16 = arith.constant 0 : index
    %12 = vector.load %arg4[%c2_14, %c0_15, %c0_16] : memref<4x36x49xf32, #tpu.memory_space<vmem>>, vector<1x36x49xf32>
    %13 = vector.shape_cast %12 : vector<1x36x49xf32> to vector<36x49xf32>
    %c3_17 = arith.constant 3 : index
    %c0_18 = arith.constant 0 : index
    %c0_19 = arith.constant 0 : index
    %14 = vector.load %arg4[%c3_17, %c0_18, %c0_19] : memref<4x36x49xf32, #tpu.memory_space<vmem>>, vector<1x36x49xf32>
    %15 = vector.shape_cast %14 : vector<1x36x49xf32> to vector<36x49xf32>
    %c0_20 = arith.constant 0 : index
    %c0_21 = arith.constant 0 : index
    %c0_22 = arith.constant 0 : index
    %16 = vector.load %arg5[%c0_20, %c0_21, %c0_22] : memref<4x16x32xf32, #tpu.memory_space<vmem>>, vector<1x16x32xf32>
    %17 = vector.shape_cast %16 : vector<1x16x32xf32> to vector<16x32xf32>
    %c1_23 = arith.constant 1 : index
    %c0_24 = arith.constant 0 : index
    %c0_25 = arith.constant 0 : index
    %18 = vector.load %arg5[%c1_23, %c0_24, %c0_25] : memref<4x16x32xf32, #tpu.memory_space<vmem>>, vector<1x16x32xf32>
    %19 = vector.shape_cast %18 : vector<1x16x32xf32> to vector<16x32xf32>
    %c2_26 = arith.constant 2 : index
    %c0_27 = arith.constant 0 : index
    %c0_28 = arith.constant 0 : index
    %20 = vector.load %arg5[%c2_26, %c0_27, %c0_28] : memref<4x16x32xf32, #tpu.memory_space<vmem>>, vector<1x16x32xf32>
    %21 = vector.shape_cast %20 : vector<1x16x32xf32> to vector<16x32xf32>
    %c3_29 = arith.constant 3 : index
    %c0_30 = arith.constant 0 : index
    %c0_31 = arith.constant 0 : index
    %22 = vector.load %arg5[%c3_29, %c0_30, %c0_31] : memref<4x16x32xf32, #tpu.memory_space<vmem>>, vector<1x16x32xf32>
    %23 = vector.shape_cast %22 : vector<1x16x32xf32> to vector<16x32xf32>
    %c0_32 = arith.constant 0 : index
    %c0_33 = arith.constant 0 : index
    %c0_34 = arith.constant 0 : index
    %24 = vector.load %arg7[%c0_32, %c0_33, %c0_34] : memref<4x25x36xf32, #tpu.memory_space<vmem>>, vector<1x25x36xf32>
    %25 = vector.shape_cast %24 : vector<1x25x36xf32> to vector<25x36xf32>
    %c1_35 = arith.constant 1 : index
    %c0_36 = arith.constant 0 : index
    %c0_37 = arith.constant 0 : index
    %26 = vector.load %arg7[%c1_35, %c0_36, %c0_37] : memref<4x25x36xf32, #tpu.memory_space<vmem>>, vector<1x25x36xf32>
    %27 = vector.shape_cast %26 : vector<1x25x36xf32> to vector<25x36xf32>
    %c2_38 = arith.constant 2 : index
    %c0_39 = arith.constant 0 : index
    %c0_40 = arith.constant 0 : index
    %28 = vector.load %arg7[%c2_38, %c0_39, %c0_40] : memref<4x25x36xf32, #tpu.memory_space<vmem>>, vector<1x25x36xf32>
    %29 = vector.shape_cast %28 : vector<1x25x36xf32> to vector<25x36xf32>
    %c3_41 = arith.constant 3 : index
    %c0_42 = arith.constant 0 : index
    %c0_43 = arith.constant 0 : index
    %30 = vector.load %arg7[%c3_41, %c0_42, %c0_43] : memref<4x25x36xf32, #tpu.memory_space<vmem>>, vector<1x25x36xf32>
    %31 = vector.shape_cast %30 : vector<1x25x36xf32> to vector<25x36xf32>
    %c0_44 = arith.constant 0 : index
    %c0_45 = arith.constant 0 : index
    %c0_46 = arith.constant 0 : index
    %32 = vector.load %arg8[%c0_44, %c0_45, %c0_46] : memref<4x32x64xf32, #tpu.memory_space<vmem>>, vector<1x32x64xf32>
    %33 = vector.shape_cast %32 : vector<1x32x64xf32> to vector<32x64xf32>
    %c1_47 = arith.constant 1 : index
    %c0_48 = arith.constant 0 : index
    %c0_49 = arith.constant 0 : index
    %34 = vector.load %arg8[%c1_47, %c0_48, %c0_49] : memref<4x32x64xf32, #tpu.memory_space<vmem>>, vector<1x32x64xf32>
    %35 = vector.shape_cast %34 : vector<1x32x64xf32> to vector<32x64xf32>
    %c2_50 = arith.constant 2 : index
    %c0_51 = arith.constant 0 : index
    %c0_52 = arith.constant 0 : index
    %36 = vector.load %arg8[%c2_50, %c0_51, %c0_52] : memref<4x32x64xf32, #tpu.memory_space<vmem>>, vector<1x32x64xf32>
    %37 = vector.shape_cast %36 : vector<1x32x64xf32> to vector<32x64xf32>
    %c3_53 = arith.constant 3 : index
    %c0_54 = arith.constant 0 : index
    %c0_55 = arith.constant 0 : index
    %38 = vector.load %arg8[%c3_53, %c0_54, %c0_55] : memref<4x32x64xf32, #tpu.memory_space<vmem>>, vector<1x32x64xf32>
    %39 = vector.shape_cast %38 : vector<1x32x64xf32> to vector<32x64xf32>
    %c0_56 = arith.constant 0 : index
    %c0_57 = arith.constant 0 : index
    %40 = vector.load %arg3[%c0_56, %c0_57] : memref<1x16xf32, #tpu.memory_space<vmem>>, vector<1x16xf32>
    %c0_58 = arith.constant 0 : index
    %c0_59 = arith.constant 0 : index
    %41 = vector.load %arg6[%c0_58, %c0_59] : memref<1x32xf32, #tpu.memory_space<vmem>>, vector<1x32xf32>
    %c0_60 = arith.constant 0 : index
    %c0_61 = arith.constant 0 : index
    %42 = vector.load %arg9[%c0_60, %c0_61] : memref<1x64xf32, #tpu.memory_space<vmem>>, vector<1x64xf32>
    %c0_62 = arith.constant 0 : index
    %c0_63 = arith.constant 0 : index
    %c0_64 = arith.constant 0 : index
    %43 = vector.load %arg1[%c0_62, %c0_63, %c0_64] : memref<2x49x27xf32, #tpu.memory_space<vmem>>, vector<1x49x27xf32>
    %44 = vector.shape_cast %43 : vector<1x49x27xf32> to vector<49x27xf32>
    %cst = arith.constant dense<0.000000e+00> : vector<49x16xf32>
    %45 = tpu.matmul %44, %1, %cst {dimension_numbers = #tpu.dot_dimension_numbers<[1], [0], [0], [1], [0, 0, 1, 1], [], []>} : vector<49x27xf32>, vector<27x16xf32>, vector<49x16xf32> -> vector<49x16xf32>
    %46 = vector.broadcast %40 : vector<1x16xf32> to vector<49x16xf32>
    %47 = arith.addf %45, %46 : vector<49x16xf32>
    %cst_65 = arith.constant 0.000000e+00 : f32
    %48 = vector.broadcast %cst_65 : f32 to vector<49x16xf32>
    %49 = arith.maximumf %47, %48 : vector<49x16xf32>
    %cst_66 = arith.constant dense<0.000000e+00> : vector<49x16xf32>
    %50 = tpu.matmul %44, %3, %cst_66 {dimension_numbers = #tpu.dot_dimension_numbers<[1], [0], [0], [1], [0, 0, 1, 1], [], []>} : vector<49x27xf32>, vector<27x16xf32>, vector<49x16xf32> -> vector<49x16xf32>
    %51 = vector.broadcast %40 : vector<1x16xf32> to vector<49x16xf32>
    %52 = arith.addf %50, %51 : vector<49x16xf32>
    %cst_67 = arith.constant 0.000000e+00 : f32
    %53 = vector.broadcast %cst_67 : f32 to vector<49x16xf32>
    %54 = arith.maximumf %52, %53 : vector<49x16xf32>
    %cst_68 = arith.constant dense<0.000000e+00> : vector<49x16xf32>
    %55 = tpu.matmul %44, %5, %cst_68 {dimension_numbers = #tpu.dot_dimension_numbers<[1], [0], [0], [1], [0, 0, 1, 1], [], []>} : vector<49x27xf32>, vector<27x16xf32>, vector<49x16xf32> -> vector<49x16xf32>
    %56 = vector.broadcast %40 : vector<1x16xf32> to vector<49x16xf32>
    %57 = arith.addf %55, %56 : vector<49x16xf32>
    %cst_69 = arith.constant 0.000000e+00 : f32
    %58 = vector.broadcast %cst_69 : f32 to vector<49x16xf32>
    %59 = arith.maximumf %57, %58 : vector<49x16xf32>
    %cst_70 = arith.constant dense<0.000000e+00> : vector<49x16xf32>
    %60 = tpu.matmul %44, %7, %cst_70 {dimension_numbers = #tpu.dot_dimension_numbers<[1], [0], [0], [1], [0, 0, 1, 1], [], []>} : vector<49x27xf32>, vector<27x16xf32>, vector<49x16xf32> -> vector<49x16xf32>
    %61 = vector.broadcast %40 : vector<1x16xf32> to vector<49x16xf32>
    %62 = arith.addf %60, %61 : vector<49x16xf32>
    %cst_71 = arith.constant 0.000000e+00 : f32
    %63 = vector.broadcast %cst_71 : f32 to vector<49x16xf32>
    %64 = arith.maximumf %62, %63 : vector<49x16xf32>
    %65 = arith.maximumf %49, %54 : vector<49x16xf32>
    %66 = arith.maximumf %59, %64 : vector<49x16xf32>
    %67 = arith.maximumf %65, %66 : vector<49x16xf32>
    %cst_72 = arith.constant dense<0.000000e+00> : vector<36x16xf32>
    %68 = tpu.matmul %9, %67, %cst_72 {dimension_numbers = #tpu.dot_dimension_numbers<[1], [0], [0], [1], [0, 0, 1, 1], [], []>} : vector<36x49xf32>, vector<49x16xf32>, vector<36x16xf32> -> vector<36x16xf32>
    %cst_73 = arith.constant dense<0.000000e+00> : vector<36x32xf32>
    %69 = tpu.matmul %68, %17, %cst_73 {dimension_numbers = #tpu.dot_dimension_numbers<[1], [0], [0], [1], [0, 0, 1, 1], [], []>} : vector<36x16xf32>, vector<16x32xf32>, vector<36x32xf32> -> vector<36x32xf32>
    %cst_74 = arith.constant dense<0.000000e+00> : vector<36x16xf32>
    %70 = tpu.matmul %11, %67, %cst_74 {dimension_numbers = #tpu.dot_dimension_numbers<[1], [0], [0], [1], [0, 0, 1, 1], [], []>} : vector<36x49xf32>, vector<49x16xf32>, vector<36x16xf32> -> vector<36x16xf32>
    %cst_75 = arith.constant dense<0.000000e+00> : vector<36x32xf32>
    %71 = tpu.matmul %70, %19, %cst_75 {dimension_numbers = #tpu.dot_dimension_numbers<[1], [0], [0], [1], [0, 0, 1, 1], [], []>} : vector<36x16xf32>, vector<16x32xf32>, vector<36x32xf32> -> vector<36x32xf32>
    %72 = arith.addf %69, %71 : vector<36x32xf32>
    %cst_76 = arith.constant dense<0.000000e+00> : vector<36x16xf32>
    %73 = tpu.matmul %13, %67, %cst_76 {dimension_numbers = #tpu.dot_dimension_numbers<[1], [0], [0], [1], [0, 0, 1, 1], [], []>} : vector<36x49xf32>, vector<49x16xf32>, vector<36x16xf32> -> vector<36x16xf32>
    %cst_77 = arith.constant dense<0.000000e+00> : vector<36x32xf32>
    %74 = tpu.matmul %73, %21, %cst_77 {dimension_numbers = #tpu.dot_dimension_numbers<[1], [0], [0], [1], [0, 0, 1, 1], [], []>} : vector<36x16xf32>, vector<16x32xf32>, vector<36x32xf32> -> vector<36x32xf32>
    %75 = arith.addf %72, %74 : vector<36x32xf32>
    %cst_78 = arith.constant dense<0.000000e+00> : vector<36x16xf32>
    %76 = tpu.matmul %15, %67, %cst_78 {dimension_numbers = #tpu.dot_dimension_numbers<[1], [0], [0], [1], [0, 0, 1, 1], [], []>} : vector<36x49xf32>, vector<49x16xf32>, vector<36x16xf32> -> vector<36x16xf32>
    %cst_79 = arith.constant dense<0.000000e+00> : vector<36x32xf32>
    %77 = tpu.matmul %76, %23, %cst_79 {dimension_numbers = #tpu.dot_dimension_numbers<[1], [0], [0], [1], [0, 0, 1, 1], [], []>} : vector<36x16xf32>, vector<16x32xf32>, vector<36x32xf32> -> vector<36x32xf32>
    %78 = arith.addf %75, %77 : vector<36x32xf32>
    %79 = vector.broadcast %41 : vector<1x32xf32> to vector<36x32xf32>
    %80 = arith.addf %78, %79 : vector<36x32xf32>
    %cst_80 = arith.constant 0.000000e+00 : f32
    %81 = vector.broadcast %cst_80 : f32 to vector<36x32xf32>
    %82 = arith.maximumf %80, %81 : vector<36x32xf32>
    %cst_81 = arith.constant dense<0.000000e+00> : vector<25x32xf32>
    %83 = tpu.matmul %25, %82, %cst_81 {dimension_numbers = #tpu.dot_dimension_numbers<[1], [0], [0], [1], [0, 0, 1, 1], [], []>} : vector<25x36xf32>, vector<36x32xf32>, vector<25x32xf32> -> vector<25x32xf32>
    %cst_82 = arith.constant dense<0.000000e+00> : vector<25x64xf32>
    %84 = tpu.matmul %83, %33, %cst_82 {dimension_numbers = #tpu.dot_dimension_numbers<[1], [0], [0], [1], [0, 0, 1, 1], [], []>} : vector<25x32xf32>, vector<32x64xf32>, vector<25x64xf32> -> vector<25x64xf32>
    %cst_83 = arith.constant dense<0.000000e+00> : vector<25x32xf32>
    %85 = tpu.matmul %27, %82, %cst_83 {dimension_numbers = #tpu.dot_dimension_numbers<[1], [0], [0], [1], [0, 0, 1, 1], [], []>} : vector<25x36xf32>, vector<36x32xf32>, vector<25x32xf32> -> vector<25x32xf32>
    %cst_84 = arith.constant dense<0.000000e+00> : vector<25x64xf32>
    %86 = tpu.matmul %85, %35, %cst_84 {dimension_numbers = #tpu.dot_dimension_numbers<[1], [0], [0], [1], [0, 0, 1, 1], [], []>} : vector<25x32xf32>, vector<32x64xf32>, vector<25x64xf32> -> vector<25x64xf32>
    %87 = arith.addf %84, %86 : vector<25x64xf32>
    %cst_85 = arith.constant dense<0.000000e+00> : vector<25x32xf32>
    %88 = tpu.matmul %29, %82, %cst_85 {dimension_numbers = #tpu.dot_dimension_numbers<[1], [0], [0], [1], [0, 0, 1, 1], [], []>} : vector<25x36xf32>, vector<36x32xf32>, vector<25x32xf32> -> vector<25x32xf32>
    %cst_86 = arith.constant dense<0.000000e+00> : vector<25x64xf32>
    %89 = tpu.matmul %88, %37, %cst_86 {dimension_numbers = #tpu.dot_dimension_numbers<[1], [0], [0], [1], [0, 0, 1, 1], [], []>} : vector<25x32xf32>, vector<32x64xf32>, vector<25x64xf32> -> vector<25x64xf32>
    %90 = arith.addf %87, %89 : vector<25x64xf32>
    %cst_87 = arith.constant dense<0.000000e+00> : vector<25x32xf32>
    %91 = tpu.matmul %31, %82, %cst_87 {dimension_numbers = #tpu.dot_dimension_numbers<[1], [0], [0], [1], [0, 0, 1, 1], [], []>} : vector<25x36xf32>, vector<36x32xf32>, vector<25x32xf32> -> vector<25x32xf32>
    %cst_88 = arith.constant dense<0.000000e+00> : vector<25x64xf32>
    %92 = tpu.matmul %91, %39, %cst_88 {dimension_numbers = #tpu.dot_dimension_numbers<[1], [0], [0], [1], [0, 0, 1, 1], [], []>} : vector<25x32xf32>, vector<32x64xf32>, vector<25x64xf32> -> vector<25x64xf32>
    %93 = arith.addf %90, %92 : vector<25x64xf32>
    %94 = vector.broadcast %42 : vector<1x64xf32> to vector<25x64xf32>
    %95 = arith.addf %93, %94 : vector<25x64xf32>
    %cst_89 = arith.constant 0.000000e+00 : f32
    %96 = vector.broadcast %cst_89 : f32 to vector<25x64xf32>
    %97 = arith.maximumf %95, %96 : vector<25x64xf32>
    %c0_90 = arith.constant 0 : index
    %c0_91 = arith.constant 0 : index
    %c0_92 = arith.constant 0 : index
    %98 = vector.load %arg10[%c0_90, %c0_91, %c0_92] : memref<2x25x64xf32, #tpu.memory_space<vmem>>, vector<1x25x64xf32>
    %99 = vector.shape_cast %98 : vector<1x25x64xf32> to vector<25x64xf32>
    %100 = vector.shape_cast %97 : vector<25x64xf32> to vector<1x25x64xf32>
    tpu.vector_store %arg10[%c0_90, %c0_91, %c0_92], %100 {strides = array<i32>} : memref<2x25x64xf32, #tpu.memory_space<vmem>>, vector<1x25x64xf32>,
    %c1_93 = arith.constant 1 : index
    %c0_94 = arith.constant 0 : index
    %c0_95 = arith.constant 0 : index
    %101 = vector.load %arg1[%c1_93, %c0_94, %c0_95] : memref<2x49x27xf32, #tpu.memory_space<vmem>>, vector<1x49x27xf32>
    %102 = vector.shape_cast %101 : vector<1x49x27xf32> to vector<49x27xf32>
    %cst_96 = arith.constant dense<0.000000e+00> : vector<49x16xf32>
    %103 = tpu.matmul %102, %1, %cst_96 {dimension_numbers = #tpu.dot_dimension_numbers<[1], [0], [0], [1], [0, 0, 1, 1], [], []>} : vector<49x27xf32>, vector<27x16xf32>, vector<49x16xf32> -> vector<49x16xf32>
    %104 = vector.broadcast %40 : vector<1x16xf32> to vector<49x16xf32>
    %105 = arith.addf %103, %104 : vector<49x16xf32>
    %cst_97 = arith.constant 0.000000e+00 : f32
    %106 = vector.broadcast %cst_97 : f32 to vector<49x16xf32>
    %107 = arith.maximumf %105, %106 : vector<49x16xf32>
    %cst_98 = arith.constant dense<0.000000e+00> : vector<49x16xf32>
    %108 = tpu.matmul %102, %3, %cst_98 {dimension_numbers = #tpu.dot_dimension_numbers<[1], [0], [0], [1], [0, 0, 1, 1], [], []>} : vector<49x27xf32>, vector<27x16xf32>, vector<49x16xf32> -> vector<49x16xf32>
    %109 = vector.broadcast %40 : vector<1x16xf32> to vector<49x16xf32>
    %110 = arith.addf %108, %109 : vector<49x16xf32>
    %cst_99 = arith.constant 0.000000e+00 : f32
    %111 = vector.broadcast %cst_99 : f32 to vector<49x16xf32>
    %112 = arith.maximumf %110, %111 : vector<49x16xf32>
    %cst_100 = arith.constant dense<0.000000e+00> : vector<49x16xf32>
    %113 = tpu.matmul %102, %5, %cst_100 {dimension_numbers = #tpu.dot_dimension_numbers<[1], [0], [0], [1], [0, 0, 1, 1], [], []>} : vector<49x27xf32>, vector<27x16xf32>, vector<49x16xf32> -> vector<49x16xf32>
    %114 = vector.broadcast %40 : vector<1x16xf32> to vector<49x16xf32>
    %115 = arith.addf %113, %114 : vector<49x16xf32>
    %cst_101 = arith.constant 0.000000e+00 : f32
    %116 = vector.broadcast %cst_101 : f32 to vector<49x16xf32>
    %117 = arith.maximumf %115, %116 : vector<49x16xf32>
    %cst_102 = arith.constant dense<0.000000e+00> : vector<49x16xf32>
    %118 = tpu.matmul %102, %7, %cst_102 {dimension_numbers = #tpu.dot_dimension_numbers<[1], [0], [0], [1], [0, 0, 1, 1], [], []>} : vector<49x27xf32>, vector<27x16xf32>, vector<49x16xf32> -> vector<49x16xf32>
    %119 = vector.broadcast %40 : vector<1x16xf32> to vector<49x16xf32>
    %120 = arith.addf %118, %119 : vector<49x16xf32>
    %cst_103 = arith.constant 0.000000e+00 : f32
    %121 = vector.broadcast %cst_103 : f32 to vector<49x16xf32>
    %122 = arith.maximumf %120, %121 : vector<49x16xf32>
    %123 = arith.maximumf %107, %112 : vector<49x16xf32>
    %124 = arith.maximumf %117, %122 : vector<49x16xf32>
    %125 = arith.maximumf %123, %124 : vector<49x16xf32>
    %cst_104 = arith.constant dense<0.000000e+00> : vector<36x16xf32>
    %126 = tpu.matmul %9, %125, %cst_104 {dimension_numbers = #tpu.dot_dimension_numbers<[1], [0], [0], [1], [0, 0, 1, 1], [], []>} : vector<36x49xf32>, vector<49x16xf32>, vector<36x16xf32> -> vector<36x16xf32>
    %cst_105 = arith.constant dense<0.000000e+00> : vector<36x32xf32>
    %127 = tpu.matmul %126, %17, %cst_105 {dimension_numbers = #tpu.dot_dimension_numbers<[1], [0], [0], [1], [0, 0, 1, 1], [], []>} : vector<36x16xf32>, vector<16x32xf32>, vector<36x32xf32> -> vector<36x32xf32>
    %cst_106 = arith.constant dense<0.000000e+00> : vector<36x16xf32>
    %128 = tpu.matmul %11, %125, %cst_106 {dimension_numbers = #tpu.dot_dimension_numbers<[1], [0], [0], [1], [0, 0, 1, 1], [], []>} : vector<36x49xf32>, vector<49x16xf32>, vector<36x16xf32> -> vector<36x16xf32>
    %cst_107 = arith.constant dense<0.000000e+00> : vector<36x32xf32>
    %129 = tpu.matmul %128, %19, %cst_107 {dimension_numbers = #tpu.dot_dimension_numbers<[1], [0], [0], [1], [0, 0, 1, 1], [], []>} : vector<36x16xf32>, vector<16x32xf32>, vector<36x32xf32> -> vector<36x32xf32>
    %130 = arith.addf %127, %129 : vector<36x32xf32>
    %cst_108 = arith.constant dense<0.000000e+00> : vector<36x16xf32>
    %131 = tpu.matmul %13, %125, %cst_108 {dimension_numbers = #tpu.dot_dimension_numbers<[1], [0], [0], [1], [0, 0, 1, 1], [], []>} : vector<36x49xf32>, vector<49x16xf32>, vector<36x16xf32> -> vector<36x16xf32>
    %cst_109 = arith.constant dense<0.000000e+00> : vector<36x32xf32>
    %132 = tpu.matmul %131, %21, %cst_109 {dimension_numbers = #tpu.dot_dimension_numbers<[1], [0], [0], [1], [0, 0, 1, 1], [], []>} : vector<36x16xf32>, vector<16x32xf32>, vector<36x32xf32> -> vector<36x32xf32>
    %133 = arith.addf %130, %132 : vector<36x32xf32>
    %cst_110 = arith.constant dense<0.000000e+00> : vector<36x16xf32>
    %134 = tpu.matmul %15, %125, %cst_110 {dimension_numbers = #tpu.dot_dimension_numbers<[1], [0], [0], [1], [0, 0, 1, 1], [], []>} : vector<36x49xf32>, vector<49x16xf32>, vector<36x16xf32> -> vector<36x16xf32>
    %cst_111 = arith.constant dense<0.000000e+00> : vector<36x32xf32>
    %135 = tpu.matmul %134, %23, %cst_111 {dimension_numbers = #tpu.dot_dimension_numbers<[1], [0], [0], [1], [0, 0, 1, 1], [], []>} : vector<36x16xf32>, vector<16x32xf32>, vector<36x32xf32> -> vector<36x32xf32>
    %136 = arith.addf %133, %135 : vector<36x32xf32>
    %137 = vector.broadcast %41 : vector<1x32xf32> to vector<36x32xf32>
    %138 = arith.addf %136, %137 : vector<36x32xf32>
    %cst_112 = arith.constant 0.000000e+00 : f32
    %139 = vector.broadcast %cst_112 : f32 to vector<36x32xf32>
    %140 = arith.maximumf %138, %139 : vector<36x32xf32>
    %cst_113 = arith.constant dense<0.000000e+00> : vector<25x32xf32>
    %141 = tpu.matmul %25, %140, %cst_113 {dimension_numbers = #tpu.dot_dimension_numbers<[1], [0], [0], [1], [0, 0, 1, 1], [], []>} : vector<25x36xf32>, vector<36x32xf32>, vector<25x32xf32> -> vector<25x32xf32>
    %cst_114 = arith.constant dense<0.000000e+00> : vector<25x64xf32>
    %142 = tpu.matmul %141, %33, %cst_114 {dimension_numbers = #tpu.dot_dimension_numbers<[1], [0], [0], [1], [0, 0, 1, 1], [], []>} : vector<25x32xf32>, vector<32x64xf32>, vector<25x64xf32> -> vector<25x64xf32>
    %cst_115 = arith.constant dense<0.000000e+00> : vector<25x32xf32>
    %143 = tpu.matmul %27, %140, %cst_115 {dimension_numbers = #tpu.dot_dimension_numbers<[1], [0], [0], [1], [0, 0, 1, 1], [], []>} : vector<25x36xf32>, vector<36x32xf32>, vector<25x32xf32> -> vector<25x32xf32>
    %cst_116 = arith.constant dense<0.000000e+00> : vector<25x64xf32>
    %144 = tpu.matmul %143, %35, %cst_116 {dimension_numbers = #tpu.dot_dimension_numbers<[1], [0], [0], [1], [0, 0, 1, 1], [], []>} : vector<25x32xf32>, vector<32x64xf32>, vector<25x64xf32> -> vector<25x64xf32>
    %145 = arith.addf %142, %144 : vector<25x64xf32>
    %cst_117 = arith.constant dense<0.000000e+00> : vector<25x32xf32>
    %146 = tpu.matmul %29, %140, %cst_117 {dimension_numbers = #tpu.dot_dimension_numbers<[1], [0], [0], [1], [0, 0, 1, 1], [], []>} : vector<25x36xf32>, vector<36x32xf32>, vector<25x32xf32> -> vector<25x32xf32>
    %cst_118 = arith.constant dense<0.000000e+00> : vector<25x64xf32>
    %147 = tpu.matmul %146, %37, %cst_118 {dimension_numbers = #tpu.dot_dimension_numbers<[1], [0], [0], [1], [0, 0, 1, 1], [], []>} : vector<25x32xf32>, vector<32x64xf32>, vector<25x64xf32> -> vector<25x64xf32>
    %148 = arith.addf %145, %147 : vector<25x64xf32>
    %cst_119 = arith.constant dense<0.000000e+00> : vector<25x32xf32>
    %149 = tpu.matmul %31, %140, %cst_119 {dimension_numbers = #tpu.dot_dimension_numbers<[1], [0], [0], [1], [0, 0, 1, 1], [], []>} : vector<25x36xf32>, vector<36x32xf32>, vector<25x32xf32> -> vector<25x32xf32>
    %cst_120 = arith.constant dense<0.000000e+00> : vector<25x64xf32>
    %150 = tpu.matmul %149, %39, %cst_120 {dimension_numbers = #tpu.dot_dimension_numbers<[1], [0], [0], [1], [0, 0, 1, 1], [], []>} : vector<25x32xf32>, vector<32x64xf32>, vector<25x64xf32> -> vector<25x64xf32>
    %151 = arith.addf %148, %150 : vector<25x64xf32>
    %152 = vector.broadcast %42 : vector<1x64xf32> to vector<25x64xf32>
    %153 = arith.addf %151, %152 : vector<25x64xf32>
    %cst_121 = arith.constant 0.000000e+00 : f32
    %154 = vector.broadcast %cst_121 : f32 to vector<25x64xf32>
    %155 = arith.maximumf %153, %154 : vector<25x64xf32>
    %c1_122 = arith.constant 1 : index
    %c0_123 = arith.constant 0 : index
    %c0_124 = arith.constant 0 : index
    %156 = vector.load %arg10[%c1_122, %c0_123, %c0_124] : memref<2x25x64xf32, #tpu.memory_space<vmem>>, vector<1x25x64xf32>
    %157 = vector.shape_cast %156 : vector<1x25x64xf32> to vector<25x64xf32>
    %158 = vector.shape_cast %155 : vector<25x64xf32> to vector<1x25x64xf32>
    tpu.vector_store %arg10[%c1_122, %c0_123, %c0_124], %158 {strides = array<i32>} : memref<2x25x64xf32, #tpu.memory_space<vmem>>, vector<1x25x64xf32>,
    return
  }
  func.func @transform_0(%arg0: i32) -> (i32, i32, i32) {
    %c0_i32 = arith.constant 0 : i32
    %c0_i32_0 = arith.constant 0 : i32
    %c0_i32_1 = arith.constant 0 : i32
    return %arg0, %c0_i32, %c0_i32_0 : i32, i32, i32
  }
  func.func @transform_1(%arg0: i32) -> (i32, i32, i32) {
    %c0_i32 = arith.constant 0 : i32
    %c0_i32_0 = arith.constant 0 : i32
    %c0_i32_1 = arith.constant 0 : i32
    %c0_i32_2 = arith.constant 0 : i32
    return %c0_i32, %c0_i32_0, %c0_i32_1 : i32, i32, i32
  }
  func.func @transform_2(%arg0: i32) -> (i32, i32) {
    %c0_i32 = arith.constant 0 : i32
    %c0_i32_0 = arith.constant 0 : i32
    %c0_i32_1 = arith.constant 0 : i32
    return %c0_i32, %c0_i32_0 : i32, i32
  }
  func.func @transform_3(%arg0: i32) -> (i32, i32, i32) {
    %c0_i32 = arith.constant 0 : i32
    %c0_i32_0 = arith.constant 0 : i32
    %c0_i32_1 = arith.constant 0 : i32
    %c0_i32_2 = arith.constant 0 : i32
    return %c0_i32, %c0_i32_0, %c0_i32_1 : i32, i32, i32
  }
  func.func @transform_4(%arg0: i32) -> (i32, i32, i32) {
    %c0_i32 = arith.constant 0 : i32
    %c0_i32_0 = arith.constant 0 : i32
    %c0_i32_1 = arith.constant 0 : i32
    %c0_i32_2 = arith.constant 0 : i32
    return %c0_i32, %c0_i32_0, %c0_i32_1 : i32, i32, i32
  }
  func.func @transform_5(%arg0: i32) -> (i32, i32) {
    %c0_i32 = arith.constant 0 : i32
    %c0_i32_0 = arith.constant 0 : i32
    %c0_i32_1 = arith.constant 0 : i32
    return %c0_i32, %c0_i32_0 : i32, i32
  }
  func.func @transform_6(%arg0: i32) -> (i32, i32, i32) {
    %c0_i32 = arith.constant 0 : i32
    %c0_i32_0 = arith.constant 0 : i32
    %c0_i32_1 = arith.constant 0 : i32
    %c0_i32_2 = arith.constant 0 : i32
    return %c0_i32, %c0_i32_0, %c0_i32_1 : i32, i32, i32
  }
  func.func @transform_7(%arg0: i32) -> (i32, i32, i32) {
    %c0_i32 = arith.constant 0 : i32
    %c0_i32_0 = arith.constant 0 : i32
    %c0_i32_1 = arith.constant 0 : i32
    %c0_i32_2 = arith.constant 0 : i32
    return %c0_i32, %c0_i32_0, %c0_i32_1 : i32, i32, i32
  }
  func.func @transform_8(%arg0: i32) -> (i32, i32) {
    %c0_i32 = arith.constant 0 : i32
    %c0_i32_0 = arith.constant 0 : i32
    %c0_i32_1 = arith.constant 0 : i32
    return %c0_i32, %c0_i32_0 : i32, i32
  }
  func.func @transform_9(%arg0: i32) -> (i32, i32, i32) {
    %c0_i32 = arith.constant 0 : i32
    %c0_i32_0 = arith.constant 0 : i32
    %c0_i32_1 = arith.constant 0 : i32
    return %arg0, %c0_i32, %c0_i32_0 : i32, i32, i32
  }
}

</mosaic_0001>

<bundles_post_ra>
// kernel: conv_encoder_forward.1
= control target key start
LH: loop header
LB: loop body
LE: loop exit
PB: predicated region body
PF: predicated region fallthrough
CT: control target
= control target key end

     0   :  { %s6395_s30 = smov 0   ;;  %s7935_s0 = inlined_call_operand.vmem [shape: f32[8,49,27], index: 0, kind: input, shape index: {}]   ;;  %s7936_s1 = inlined_call_operand.vmem [shape: f32[4,27,16], index: 1, kind: input, shape index: {}]   ;;  %s7937_s2 = inlined_call_operand.vmem [shape: f32[1,16], index: 2, kind: input, shape index: {}]   ;;  %s7938_s3 = inlined_call_operand.vmem [shape: f32[4,36,49], index: 3, kind: input, shape index: {}]   ;;  %s7939_s4 = inlined_call_operand.vmem [shape: f32[4,16,32], index: 4, kind: input, shape index: {}]   ;;  %s7940_s5 = inlined_call_operand.vmem [shape: f32[1,32], index: 5, kind: input, shape index: {}]   ;;  %s7941_s6 = inlined_call_operand.vmem [shape: f32[4,25,36], index: 6, kind: input, shape index: {}]   ;;  %s7942_s7 = inlined_call_operand.vmem [shape: f32[4,32,64], index: 7, kind: input, shape index: {}]   ;;  %s7943_s8 = inlined_call_operand.vmem [shape: f32[1,64], index: 8, kind: input, shape index: {}]   ;;  %s7944_s9 = inlined_call_operand.vmem [shape: f32[8,25,64], index: 9, kind: output, shape index: {}]  }
   0x1 LB: > { %s4705_s10 = sadd.s32 4294967295, %s6341_s30   ;;  %p4709_p0 = scmp.ge.s32.totalorder %s6341_s30, 1  ;;  %s6341_s30 = sphi %s6395_s30, %s19_s30  }
   0x2   : > { %p289_p1 = scmp.lt.s32.totalorder %s6341_s30, 5 }
   0x4   : > { %p290_p2 = pnand %p4709_p0, %p289_p1 }
   0x5   : > { %s4710_s19 = sshll.u32 (!%p290_p2), %s4705_s10, 1 }
   0x6   : > { %293 = sbr.rel (%p290_p2) target bundleno = 3288 (0xcd8), region = 56  ;;  %p328_p3 = scmp.lt.s32.totalorder (!%p290_p2), %s4710_s19, 7 }
   0xb   : > { %v344_v0 = vld [vmem:[%s7936_s1 + $0x18] sm:$0x7]  ;;  %vm470_vm0 = vcmask 1042432   ;;  %v6343_v2 = vmov 0.0   ;;  %v343_v3 = vld [vmem:[%s7936_s1 + $0x10] sm:$0xff]  ;;  %v342_v5 = vld [vmem:[%s7936_s1 + $0x8] sm:$0xff] }
   0xc   : > { %v4718_v1 = vld [vmem:[%s7936_s1 + $0x38] sm:$0x7]  ;;  %5389 = vmatprep.subr.mxu0 %v6343_v2  ;;  %5418 = vmatprep.subr.mxu1 %v6343_v2  ;;  %v4717_v4 = vld [vmem:[%s7936_s1 + $0x30] sm:$0xff]  ;;  %v4716_v6 = vld [vmem:[%s7936_s1 + $0x28] sm:$0xff]  ;;  %s7946_s19 = smov (!%p328_p3, %s4710_s19), 7  ;;  %vm448_vm1 = vcmask 220160  }
   0xd   : > { %5390 = vmatpush3.msk.msra.mxu0 %vm470_vm0, %v344_v0  ;;  %5419 = vmatpush3.msk.msra.mxu1 %vm470_vm0, %v4718_v1  ;;  %v341_v7 = vld [vmem:[%s7936_s1] sm:$0xff]  ;;  %s6245_s28 = smul.u32 56, %s7946_s19  ;;  %vm6344_vm2 = vmmov 0   ;;  %v4722_v10 = vld [vmem:[%s7936_s1 + $0x58] sm:$0x7]  ;;  %v4721_v13 = vld [vmem:[%s7936_s1 + $0x50] sm:$0xff] }
   0xe   : > { %5391 = vmatprep.subr.mxu0 %v6343_v2  ;;  %5420 = vmatprep.subr.mxu1 %v6343_v2  ;;  %v4715_v8 = vld [vmem:[%s7936_s1 + $0x20] sm:$0xff]  ;;  %v4726_v11 = vld [vmem:[%s7936_s1 + $0x78] sm:$0x7]  ;;  %v4725_v14 = vld [vmem:[%s7936_s1 + $0x70] sm:$0xff]  ;;  %vm948_vm3 = vcmask 1040384   ;;  %vm932_vm4 = vcmask 400384  }
   0xf   : > { %5392 = vmatpush3.msra.mxu0 %v343_v3  ;;  %5421 = vmatpush3.msra.mxu1 %v4717_v4  ;;  %s6445_s11 = scalar_lea.vmem %s7935_s0, %s6245_s28  ;;  %v4720_v16 = vld [vmem:[%s7936_s1 + $0x48] sm:$0xff]  ;;  %v4719_v19 = vld [vmem:[%s7936_s1 + $0x40] sm:$0xff]  ;;  %vm1147_vm5 = vcmask 130048   ;;  %vm1804_vm6 = vcmask 293888   ;;  %vm1817_vm7 = vcmask 1043456   ;;  %vm2003_vm8 = vcmask 261120  }
  0x10   : > { %5393 = vmatprep.subr.mxu0 %v6343_v2  ;;  %5422 = vmatprep.subr.mxu1 %v6343_v2  ;;  %v435_v9 = vld [vmem:[%s6445_s11] sm:$0xff]  ;;  %v436_v12 = vld [vmem:[%s6445_s11 + $0x8] sm:$0xff]  ;;  %v437_v15 = vld [vmem:[%s6445_s11 + $0x10] sm:$0xff]  ;;  %s5012_s24 = sshll.u32 %s7946_s19, 5  ;;  %vm2608_vm9 = vcmask 523264   ;;  %vm2612_vm10 = vcmask 516096  }
  0x11   : > { %5394 = vmatpush3.msra.mxu0 %v342_v5  ;;  %5423 = vmatpush3.msra.mxu1 %v4716_v6  ;;  %v4724_v17 = vld [vmem:[%s7936_s1 + $0x68] sm:$0xff]  ;;  %v438_v18 = vld [vmem:[%s6445_s11 + $0x18] sm:$0xff]  ;;  %v4723_v20 = vld [vmem:[%s7936_s1 + $0x60] sm:$0xff]  ;;  %s7377_s26 = scalar_lea.vmem %s7944_s9, %s5012_s24 }
  0x12   : > { %5395 = vmatprep.subr.mxu0 %v6343_v2  ;;  %5424 = vmatprep.subr.mxu1 %v6343_v2  ;;  %v439_v21 = vld [vmem:[%s6445_s11 + $0x20] sm:$0xff]  ;;  %v440_v22 = vld [vmem:[%s6445_s11 + $0x28] sm:$0xff]  ;;  %v441_v23 = vld [vmem:[%s6445_s11 + $0x30] sm:$0x1] }
  0x13   : > { %5396 = vmatpush3.msra.mxu0 %v341_v7  ;;  %5397 = vmatprep.mubr.msk.f32.mxu0 %vm6344_vm2, %v6343_v2  ;;  %v6579_v24 = vld [vmem:[%s7937_s2] ss:$0 sm:$0xff] }
  0x14   : > { %5425 = vmatpush3.msra.mxu1 %v4715_v8  ;;  %5426 = vmatprep.mubr.msk.f32.mxu1 %vm6344_vm2, %v6343_v2 }
  0x15   : > { %5398 = vmatmul.mubr.msk.f32.vlgmr.msra.gmra.mxu0 %vm448_vm1, %v435_v9  ;;  %5427 = vmatmul.mubr.msk.f32.vlgmr.msra.gmra.mxu1 %vm448_vm1, %v435_v9 }
  0x16   : > { %5400 = vmatprep.mubr.msk.f32.mxu0 %vm6344_vm2, %v6343_v2  ;;  %5429 = vmatprep.mubr.msk.f32.mxu1 %vm6344_vm2, %v6343_v2 }
  0x17   : > { %5447 = vmatprep.subr.mxu0 %v6343_v2  ;;  %5476 = vmatprep.subr.mxu1 %v6343_v2 }
  0x18   : > { %5448 = vmatpush3.msk.msra.mxu0 %vm470_vm0, %v4722_v10  ;;  %5477 = vmatpush3.msk.msra.mxu1 %vm470_vm0, %v4726_v11 }
  0x19   : > { %5401 = vmatmul.mubr.msk.f32.gmra.mxu0 %vm448_vm1, %v436_v12  ;;  %5430 = vmatmul.mubr.msk.f32.gmra.mxu1 %vm448_vm1, %v436_v12 }
  0x1a   : > { %5403 = vmatprep.mubr.msk.f32.mxu0 %vm6344_vm2, %v6343_v2  ;;  %5432 = vmatprep.mubr.msk.f32.mxu1 %vm6344_vm2, %v6343_v2 }
  0x1b   : > { %5449 = vmatprep.subr.mxu0 %v6343_v2  ;;  %5478 = vmatprep.subr.mxu1 %v6343_v2 }
  0x1c   : > { %5450 = vmatpush3.msra.mxu0 %v4721_v13  ;;  %5479 = vmatpush3.msra.mxu1 %v4725_v14 }
  0x1d   : > { %5404 = vmatmul.mubr.msk.f32.gmra.mxu0 %vm448_vm1, %v437_v15  ;;  %5433 = vmatmul.mubr.msk.f32.gmra.mxu1 %vm448_vm1, %v437_v15 }
  0x1e   : > { %5406 = vmatprep.mubr.msk.f32.mxu0 %vm6344_vm2, %v6343_v2  ;;  %5435 = vmatprep.mubr.msk.f32.mxu1 %vm6344_vm2, %v6343_v2 }
  0x1f   : > { %5451 = vmatprep.subr.mxu0 %v6343_v2  ;;  %5480 = vmatprep.subr.mxu1 %v6343_v2 }
  0x20   : > { %5452 = vmatpush3.msra.mxu0 %v4720_v16  ;;  %5481 = vmatpush3.msra.mxu1 %v4724_v17 }
  0x21   : > { %5407 = vmatmul.mubr.msk.f32.gmra.mxu0 %vm448_vm1, %v438_v18  ;;  %5436 = vmatmul.mubr.msk.f32.gmra.mxu1 %vm448_vm1, %v438_v18 }
  0x22   : > { %5409 = vmatprep.mubr.msk.f32.mxu0 %vm6344_vm2, %v6343_v2  ;;  %5438 = vmatprep.mubr.msk.f32.mxu1 %vm6344_vm2, %v6343_v2 }
  0x23   : > { %5453 = vmatprep.subr.mxu0 %v6343_v2  ;;  %5482 = vmatprep.subr.mxu1 %v6343_v2 }
  0x24   : > { %5454 = vmatpush3.msra.mxu0 %v4719_v19  ;;  %5483 = vmatpush3.msra.mxu1 %v4723_v20 }
  0x25   : > { %5410 = vmatmul.mubr.msk.f32.gmra.mxu0 %vm448_vm1, %v439_v21  ;;  %5439 = vmatmul.mubr.msk.f32.gmra.mxu1 %vm448_vm1, %v439_v21 }
  0x26   : > { %5412 = vmatprep.mubr.msk.f32.mxu0 %vm6344_vm2, %v6343_v2  ;;  %5441 = vmatprep.mubr.msk.f32.mxu1 %vm6344_vm2, %v6343_v2 }
  0x27   : > { %5505 = vmatprep.subr.mxu0 %v6343_v2  ;;  %5534 = vmatprep.subr.mxu1 %v6343_v2 }
  0x29   : > { %5413 = vmatmul.mubr.msk.f32.gmra.mxu0 %vm448_vm1, %v440_v22  ;;  %5442 = vmatmul.mubr.msk.f32.gmra.mxu1 %vm448_vm1, %v440_v22 }
  0x2a   : > { %5415 = vmatprep.mubr.msk.f32.mxu0 %vm6344_vm2, %v6343_v2  ;;  %5444 = vmatprep.mubr.msk.f32.mxu1 %vm6344_vm2, %v6343_v2 }
  0x2d   : > { %5416 = vmatmul.mubr.msk.f32.gmra.mxu0 %vm448_vm1, %v441_v23  ;;  %5445 = vmatmul.mubr.msk.f32.gmra.mxu1 %vm448_vm1, %v441_v23 }
  0x2e   : > { %5455 = vmatprep.mubr.msk.f32.mxu0 %vm6344_vm2, %v6343_v2  ;;  %5484 = vmatprep.mubr.msk.f32.mxu1 %vm6344_vm2, %v6343_v2 }
  0x31   : > { %5456 = vmatmul.mubr.msk.f32.vlgmr.msra.gmra.mxu0 %vm448_vm1, %v435_v9  ;;  %5485 = vmatmul.mubr.msk.f32.vlgmr.msra.gmra.mxu1 %vm448_vm1, %v435_v9 }
  0x32   : > { %5458 = vmatprep.mubr.msk.f32.mxu0 %vm6344_vm2, %v6343_v2  ;;  %5487 = vmatprep.mubr.msk.f32.mxu1 %vm6344_vm2, %v6343_v2 }
  0x35   : > { %5459 = vmatmul.mubr.msk.f32.gmra.mxu0 %vm448_vm1, %v436_v12  ;;  %5488 = vmatmul.mubr.msk.f32.gmra.mxu1 %vm448_vm1, %v436_v12 }
  0x36   : > { %5461 = vmatprep.mubr.msk.f32.mxu0 %vm6344_vm2, %v6343_v2  ;;  %5490 = vmatprep.mubr.msk.f32.mxu1 %vm6344_vm2, %v6343_v2 }
  0x39   : > { %5462 = vmatmul.mubr.msk.f32.gmra.mxu0 %vm448_vm1, %v437_v15  ;;  %5491 = vmatmul.mubr.msk.f32.gmra.mxu1 %vm448_vm1, %v437_v15 }
  0x3a   : > { %5464 = vmatprep.mubr.msk.f32.mxu0 %vm6344_vm2, %v6343_v2  ;;  %5493 = vmatprep.mubr.msk.f32.mxu1 %vm6344_vm2, %v6343_v2 }
  0x3d   : > { %5465 = vmatmul.mubr.msk.f32.gmra.mxu0 %vm448_vm1, %v438_v18  ;;  %5494 = vmatmul.mubr.msk.f32.gmra.mxu1 %vm448_vm1, %v438_v18 }
  0x3e   : > { %5467 = vmatprep.mubr.msk.f32.mxu0 %vm6344_vm2, %v6343_v2  ;;  %5496 = vmatprep.mubr.msk.f32.mxu1 %vm6344_vm2, %v6343_v2 }
  0x41   : > { %5468 = vmatmul.mubr.msk.f32.gmra.mxu0 %vm448_vm1, %v439_v21  ;;  %5497 = vmatmul.mubr.msk.f32.gmra.mxu1 %vm448_vm1, %v439_v21 }
  0x42   : > { %5470 = vmatprep.mubr.msk.f32.mxu0 %vm6344_vm2, %v6343_v2  ;;  %5499 = vmatprep.mubr.msk.f32.mxu1 %vm6344_vm2, %v6343_v2 }
  0x45   : > { %5471 = vmatmul.mubr.msk.f32.gmra.mxu0 %vm448_vm1, %v440_v22  ;;  %5500 = vmatmul.mubr.msk.f32.gmra.mxu1 %vm448_vm1, %v440_v22 }
  0x46   : > { %5473 = vmatprep.mubr.msk.f32.mxu0 %vm6344_vm2, %v6343_v2  ;;  %5502 = vmatprep.mubr.msk.f32.mxu1 %vm6344_vm2, %v6343_v2 }
  0x49   : > { %5474 = vmatmul.mubr.msk.f32.gmra.mxu0 %vm448_vm1, %v441_v23  ;;  %5503 = vmatmul.mubr.msk.f32.gmra.mxu1 %vm448_vm1, %v441_v23 }
  0x4a   : > { %5519 = vmatprep.mubr.msk.f32.mxu0 %vm6344_vm2, %v6343_v2  ;;  %5548 = vmatprep.mubr.msk.f32.mxu1 %vm6344_vm2, %v6343_v2 }
  0xd5   : > { %v540_v25 = vpop.f32.mrf.mxu0  ;;  %v650_v26 = vpop.f32.mrf.mxu1 }
  0xd6   : > { %v541_v27 = vadd.f32 %v6579_v24, %v540_v25  ;;  %v651_v28 = vadd.f32 %v6579_v24, %v650_v26 }
  0xd7   : > { %v5399_v29 = vpop.f32.mrf.mxu0  ;;  %v5428_v30 = vpop.f32.mrf.mxu1 }
  0xd8   : > { %v574_v31 = vmax.f32 %v541_v27, 0.0  ;;  %v684_v32 = vmax.f32 %v651_v28, 0.0 }
  0xd9   : > { %v545_v33 = vpop.f32.mrf.mxu0  ;;  %v655_v34 = vpop.f32.mrf.mxu1 }
  0xda   : > { %v6583_v35 = vmax.f32 %v574_v31, %v684_v32  ;;  %v6594_v17 = vadd.f32 %v6579_v24, %v545_v33  ;;  %v6597_v18 = vadd.f32 %v6579_v24, %v655_v34 }
  0xdb   : > { %v5402_v36 = vpop.f32.mrf.mxu0  ;;  %v5431_v37 = vpop.f32.mrf.mxu1 }
  0xdd   : > { %v550_v38 = vpop.f32.mrf.mxu0  ;;  %v660_v39 = vpop.f32.mrf.mxu1 }
  0xde   : > { %v6602_v23 = vadd.f32 %v6579_v24, %v550_v38  ;;  %v6605_v25 = vadd.f32 %v6579_v24, %v660_v39 }
  0xdf   : > { %v5405_v40 = vpop.f32.mrf.mxu0  ;;  %v5434_v41 = vpop.f32.mrf.mxu1 }
  0xe1   : > { %v555_v42 = vpop.f32.mrf.mxu0  ;;  %v665_v43 = vpop.f32.mrf.mxu1 }
  0xe2   : > { %v6590_v13 = vadd.f32 %v6579_v24, %v555_v42  ;;  %v666_v29 = vadd.f32 %v6579_v24, %v665_v43 }
  0xe3   : > { %v5408_v44 = vpop.f32.mrf.mxu0  ;;  %v5437_v45 = vpop.f32.mrf.mxu1 }
  0xe4   : > { %v577_v28 = vmax.f32 %v6590_v13, 0.0 }
  0xe5   : > { %v560_v46 = vpop.f32.mrf.mxu0  ;;  %v670_v47 = vpop.f32.mrf.mxu1 }
  0xe6   : > { %v561_v16 = vadd.f32 %v6579_v24, %v560_v46  ;;  %v671_v36 = vadd.f32 %v6579_v24, %v670_v47 }
  0xe7   : > { %v5411_v48 = vpop.f32.mrf.mxu0  ;;  %v5440_v49 = vpop.f32.mrf.mxu1 }
  0xe8   : > { %v578_v34 = vmax.f32 %v561_v16, 0.0 }
  0xe9   : > { %v565_v50 = vpop.f32.mrf.mxu0  ;;  %v675_v51 = vpop.f32.mrf.mxu1 }
  0xea   : > { %v566_v30 = vadd.f32 %v6579_v24, %v565_v50  ;;  %v676_v31 = vadd.f32 %v6579_v24, %v675_v51 }
  0xeb   : > { %v5414_v52 = vpop.f32.mrf.mxu0  ;;  %v5443_v53 = vpop.f32.mrf.mxu1 }
  0xec   : > { %v579_v50 = vmax.f32 %v566_v30, 0.0  ;;  %v689_v47 = vmax.f32 %v676_v31, 0.0 }
  0xed   : > { %v570_v54 = vpop.f32.mrf.mxu0  ;;  %v680_v55 = vpop.f32.mrf.mxu1 }
  0xee   : > { %v571_v19 = vadd.f32 %v6579_v24, %v570_v54  ;;  %v681_v20 = vadd.f32 %v6579_v24, %v680_v55 }
  0xef   : > { %v5417_v56 = vpop.f32.mrf.mxu0  ;;  %v5446_v57 = vpop.f32.mrf.mxu1 }
  0xf0   : > { %v580_v39 = vmax.f32 %v571_v19, 0.0  ;;  %v690_v40 = vmax.f32 %v681_v20, 0.0 }
  0xf1   : > { %v6585_v58 = vpop.f32.mrf.mxu0  ;;  %v6587_v59 = vpop.f32.mrf.mxu1 }
  0xf3   : > { %v5457_v60 = vpop.f32.mrf.mxu0  ;;  %v5486_v61 = vpop.f32.mrf.mxu1 }
  0xf4   : > { %v688_v61 = vmax.f32 %v671_v36, 0.0  ;;  %v4727_v36 = vld [vmem:[%s7938_s3 + $0x28] sm:$0xff] }
  0xf5   : > { %v765_v62 = vpop.f32.mrf.mxu0  ;;  %v875_v63 = vpop.f32.mrf.mxu1 }
  0xf6   : > { %v915_v16 = vmax.f32 %v578_v34, %v688_v61  ;;  %v360_v34 = vld [vmem:[%s7938_s3] sm:$0xff] }
  0xf7   : > { %v5460_v0 = vpop.f32.mrf.mxu0  ;;  %v5489_v1 = vpop.f32.mrf.mxu1 }
  0xf8   : > { %v917_v0 = vmax.f32 %v580_v39, %v690_v40  ;;  %v766_v1 = vadd.f32 %v6579_v24, %v765_v62  ;;  %v576_v62 = vmax.f32 %v6602_v23, 0.0  ;;  %v4728_v39 = vld [vmem:[%s7938_s3 + $0x30] sm:$0xff] }
  0xf9   : > { %v770_v3 = vpop.f32.mrf.mxu0  ;;  %v880_v4 = vpop.f32.mrf.mxu1  ;;  %v4742_v40 = vld [vmem:[%s7939_s4 + $0x10] sm:$0xff] }
  0xfa   : > { %v771_v51 = vadd.f32 %v6579_v24, %v770_v3  ;;  %v881_v52 = vadd.f32 %v6579_v24, %v880_v4  ;;  %v916_v3 = vmax.f32 %v579_v50, %v689_v47  ;;  %v761_v4 = vadd.f32 %v6579_v24, %v6585_v58 }
  0xfb   : > { %v5463_v5 = vpop.f32.mrf.mxu0  ;;  %v5492_v6 = vpop.f32.mrf.mxu1  ;;  %v795_v19 = vmax.f32 %v766_v1, 0.0  ;;  %v685_v58 = vmax.f32 %v6597_v18, 0.0 }
  0xfc   : > { %v876_v5 = vadd.f32 %v6579_v24, %v875_v63  ;;  %v906_v13 = vmax.f32 %v881_v52, 0.0  ;;  %v686_v63 = vmax.f32 %v6605_v25, 0.0  ;;  %v794_v23 = vmax.f32 %v761_v4, 0.0  ;;  %v4733_v4 = vld [vmem:[%s7938_s3 + $0x58] sm:$0xff] }
  0xfd   : > { %v775_v7 = vpop.f32.mrf.mxu0  ;;  %v885_v8 = vpop.f32.mrf.mxu1 }
  0xfe   : > { %v776_v41 = vadd.f32 %v6579_v24, %v775_v7  ;;  %v886_v42 = vadd.f32 %v6579_v24, %v885_v8  ;;  %v905_v20 = vmax.f32 %v876_v5, 0.0 }
  0xff   : > { %v5466_v9 = vpop.f32.mrf.mxu0  ;;  %v5495_v10 = vpop.f32.mrf.mxu1 }
 0x100   : > { %v797_v6 = vmax.f32 %v776_v41, 0.0  ;;  %v907_v7 = vmax.f32 %v886_v42, 0.0  ;;  %v687_v10 = vmax.f32 %v666_v29, 0.0  ;;  %v919_v18 = vmax.f32 %v795_v19, %v905_v20  ;;  %v362_v41 = vld [vmem:[%s7938_s3 + $0x10] sm:$0xff]  ;;  %v4729_v42 = vld [vmem:[%s7938_s3 + $0x38] sm:$0xff]  ;;  %v4745_v19 = vld [vmem:[%s7939_s4 + $0x28] sm:$0xff] }
 0x101   : > { %v780_v11 = vpop.f32.mrf.mxu0  ;;  %v890_v12 = vpop.f32.mrf.mxu1  ;;  %v4744_v20 = vld [vmem:[%s7939_s4 + $0x20] sm:$0xff] }
 0x102   : > { %v781_v37 = vadd.f32 %v6579_v24, %v780_v11  ;;  %v891_v38 = vadd.f32 %v6579_v24, %v890_v12  ;;  %v871_v11 = vadd.f32 %v6579_v24, %v6587_v59  ;;  %v796_v12 = vmax.f32 %v771_v51, 0.0 }
 0x103   : > { %v5469_v14 = vpop.f32.mrf.mxu0  ;;  %v5498_v15 = vpop.f32.mrf.mxu1  ;;  %v914_v59 = vmax.f32 %v577_v28, %v687_v10  ;;  %v4732_v10 = vld [vmem:[%s7938_s3 + $0x50] sm:$0xff] }
 0x104   : > { %v798_v55 = vmax.f32 %v781_v37, 0.0  ;;  %v908_v56 = vmax.f32 %v891_v38, 0.0  ;;  %v904_v25 = vmax.f32 %v871_v11, 0.0  ;;  %v384_v37 = vld [vmem:[%s7939_s4 + $0x8] sm:$0xff]  ;;  %v4734_v11 = vld [vmem:[%s7938_s3 + $0x60] sm:$0xff] }
 0x105   : > { %v785_v21 = vpop.f32.mrf.mxu0  ;;  %v895_v22 = vpop.f32.mrf.mxu1  ;;  %v361_v38 = vld [vmem:[%s7938_s3 + $0x8] sm:$0xff] }
 0x106   : > { %v786_v26 = vadd.f32 %v6579_v24, %v785_v21  ;;  %v896_v27 = vadd.f32 %v6579_v24, %v895_v22  ;;  %v922_v14 = vmax.f32 %v798_v55, %v908_v56  ;;  %v921_v21 = vmax.f32 %v797_v6, %v907_v7 }
 0x107   : > { %v5472_v32 = vpop.f32.mrf.mxu0  ;;  %v5501_v33 = vpop.f32.mrf.mxu1  ;;  %v918_v30 = vmax.f32 %v794_v23, %v904_v25 }
 0x108   : > { %v799_v45 = vmax.f32 %v786_v26, 0.0  ;;  %v909_v46 = vmax.f32 %v896_v27, 0.0  ;;  %v920_v26 = vmax.f32 %v796_v12, %v906_v13  ;;  %v6642_v27 = vmax.f32 %v915_v16, %v922_v14  ;;  %v4735_v12 = vld [vmem:[%s7938_s3 + $0x68] sm:$0xff]  ;;  %v4736_v13 = vld [vmem:[%s7938_s3 + $0x70] sm:$0xf]  ;;  %v4737_v14 = vld [vmem:[%s7938_s3 + $0x78] sm:$0xff] }
 0x109   : > { %v790_v43 = vpop.f32.mrf.mxu0  ;;  %v900_v44 = vpop.f32.mrf.mxu1  ;;  %v6648_v28 = vmax.f32 %v914_v59, %v921_v21  ;;  %v6667_v33 = vmax.f32 %v6583_v35, %v918_v30  ;;  %v4743_v35 = vld [vmem:[%s7939_s4 + $0x18] sm:$0xff] }
 0x10a   : > { %v791_v48 = vadd.f32 %v6579_v24, %v790_v43  ;;  %v901_v49 = vadd.f32 %v6579_v24, %v900_v44  ;;  %v923_v8 = vmax.f32 %v799_v45, %v909_v46  ;;  %v575_v24 = vmax.f32 %v6594_v17, 0.0  ;;  %v363_v43 = vld [vmem:[%s7938_s3 + $0x18] sm:$0xff]  ;;  %v4730_v44 = vld [vmem:[%s7938_s3 + $0x40] sm:$0xff]  ;;  %v4731_v46 = vld [vmem:[%s7938_s3 + $0x48] sm:$0xf] }
 0x10b   : > { %v5475_v53 = vpop.f32.mrf.mxu0  ;;  %v5504_v54 = vpop.f32.mrf.mxu1  ;;  %v913_v17 = vmax.f32 %v576_v62, %v686_v63  ;;  %v364_v45 = vld [vmem:[%s7938_s3 + $0x20] sm:$0xf]  ;;  %v4739_v62 = vld [vmem:[%s7938_s3 + $0x88] sm:$0xff]  ;;  %v4740_v63 = vld [vmem:[%s7938_s3 + $0x90] sm:$0xff] }
 0x10c   : > { %v800_v57 = vmax.f32 %v791_v48, 0.0  ;;  %v910_v60 = vmax.f32 %v901_v49, 0.0  ;;  %v6632_v22 = vmax.f32 %v916_v3, %v923_v8  ;;  %v912_v29 = vmax.f32 %v575_v24, %v685_v58  ;;  %v383_v48 = vld [vmem:[%s7939_s4] sm:$0xff]  ;;  %v4741_v16 = vld [vmem:[%s7938_s3 + $0x98] sm:$0xf] }
 0x10d   : > { %v6654_v31 = vmax.f32 %v913_v17, %v920_v26 }
 0x10e   : > { %v924_v9 = vmax.f32 %v800_v57, %v910_v60  ;;  %v6660_v32 = vmax.f32 %v912_v29, %v919_v18 }
 0x110   : > { %v6628_v15 = vmax.f32 %v917_v0, %v924_v9 }
 0x112   : > { %5506 = vmatpush3.msk.msra.mxu0 %vm948_vm3, %v6628_v15  ;;  %5535 = vmatpush3.msk.msra.mxu1 %vm948_vm3, %v6628_v15 }
 0x113   : > { %5507 = vmatprep.subr.mxu0 %v6343_v2  ;;  %5536 = vmatprep.subr.mxu1 %v6343_v2 }
 0x114   : > { %5508 = vmatpush3.msra.mxu0 %v6632_v22  ;;  %5537 = vmatpush3.msra.mxu1 %v6632_v22 }
 0x115   : > { %5509 = vmatprep.subr.mxu0 %v6343_v2  ;;  %5538 = vmatprep.subr.mxu1 %v6343_v2 }
 0x116   : > { %5510 = vmatpush3.msra.mxu0 %v6642_v27  ;;  %5539 = vmatpush3.msra.mxu1 %v6642_v27 }
 0x117   : > { %5511 = vmatprep.subr.mxu0 %v6343_v2  ;;  %5540 = vmatprep.subr.mxu1 %v6343_v2 }
 0x118   : > { %5512 = vmatpush3.msra.mxu0 %v6648_v28  ;;  %5541 = vmatpush3.msra.mxu1 %v6648_v28 }
 0x119   : > { %5513 = vmatprep.subr.mxu0 %v6343_v2  ;;  %5542 = vmatprep.subr.mxu1 %v6343_v2 }
 0x11a   : > { %5514 = vmatpush3.msra.mxu0 %v6654_v31  ;;  %5543 = vmatpush3.msra.mxu1 %v6654_v31 }
 0x11b   : > { %5515 = vmatprep.subr.mxu0 %v6343_v2  ;;  %5544 = vmatprep.subr.mxu1 %v6343_v2 }
 0x11c   : > { %5516 = vmatpush3.msra.mxu0 %v6660_v32  ;;  %5545 = vmatpush3.msra.mxu1 %v6660_v32 }
 0x11d   : > { %5517 = vmatprep.subr.mxu0 %v6343_v2  ;;  %5546 = vmatprep.subr.mxu1 %v6343_v2 }
 0x11e   : > { %5518 = vmatpush3.msra.mxu0 %v6667_v33  ;;  %5547 = vmatpush3.msra.mxu1 %v6667_v33 }
 0x11f   : > { %5520 = vmatmul.mubr.msk.f32.vlgmr.msra.gmra.mxu0 %vm932_vm4, %v360_v34  ;;  %5549 = vmatmul.mubr.msk.f32.vlgmr.msra.gmra.mxu1 %vm932_vm4, %v4727_v36 }
 0x120   : > { %5522 = vmatprep.mubr.msk.f32.mxu0 %vm6344_vm2, %v6343_v2  ;;  %5551 = vmatprep.mubr.msk.f32.mxu1 %vm6344_vm2, %v6343_v2 }
 0x121   : > { %5563 = vmatprep.subr.mxu0 %v6343_v2  ;;  %5582 = vmatprep.subr.mxu1 %v6343_v2 }
 0x122   : > { %5564 = vmatpush3.msra.mxu0 %v4743_v35  ;;  %5583 = vmatpush3.msra.mxu1 %v384_v37 }
 0x123   : > { %5523 = vmatmul.mubr.msk.f32.gmra.mxu0 %vm932_vm4, %v361_v38  ;;  %5552 = vmatmul.mubr.msk.f32.gmra.mxu1 %vm932_vm4, %v4728_v39 }
 0x124   : > { %5525 = vmatprep.mubr.msk.f32.mxu0 %vm6344_vm2, %v6343_v2  ;;  %5554 = vmatprep.mubr.msk.f32.mxu1 %vm6344_vm2, %v6343_v2 }
 0x125   : > { %5565 = vmatprep.subr.mxu0 %v6343_v2  ;;  %5584 = vmatprep.subr.mxu1 %v6343_v2 }
 0x126   : > { %5566 = vmatpush3.msra.mxu0 %v4742_v40  ;;  %5585 = vmatpush3.msra.mxu1 %v383_v48 }
 0x127   : > { %5526 = vmatmul.mubr.msk.f32.gmra.mxu0 %vm932_vm4, %v362_v41  ;;  %5555 = vmatmul.mubr.msk.f32.gmra.mxu1 %vm932_vm4, %v4729_v42  ;;  %v4747_v41 = vld [vmem:[%s7939_s4 + $0x38] sm:$0xff] }
 0x128   : > { %5528 = vmatprep.mubr.msk.f32.mxu0 %vm6344_vm2, %v6343_v2  ;;  %5557 = vmatprep.mubr.msk.f32.mxu1 %vm6344_vm2, %v6343_v2 }
 0x129   : > { %5601 = vmatprep.subr.mxu0 %v6343_v2  ;;  %5630 = vmatprep.subr.mxu1 %v6343_v2 }
 0x12b   : > { %5529 = vmatmul.mubr.msk.f32.gmra.mxu0 %vm932_vm4, %v363_v43  ;;  %5558 = vmatmul.mubr.msk.f32.gmra.mxu1 %vm932_vm4, %v4730_v44  ;;  %v4746_v44 = vld [vmem:[%s7939_s4 + $0x30] sm:$0xff] }
 0x12c   : > { %5531 = vmatprep.mubr.msk.f32.mxu0 %vm6344_vm2, %v6343_v2  ;;  %5560 = vmatprep.mubr.msk.f32.mxu1 %vm6344_vm2, %v6343_v2 }
 0x12f   : > { %5532 = vmatmul.mubr.msk.f32.gmra.mxu0 %vm932_vm4, %v364_v45  ;;  %5561 = vmatmul.mubr.msk.f32.gmra.mxu1 %vm932_vm4, %v4731_v46 }
 0x130   : > { %5567 = vmatprep.mubr.msk.f32.mxu0 %vm6344_vm2, %v6343_v2  ;;  %5586 = vmatprep.mubr.msk.f32.mxu1 %vm6344_vm2, %v6343_v2 }
 0x1df   : > { %v1018_v49 = vpop.f32.mrf.mxu0  ;;  %v1123_v50 = vpop.f32.mrf.mxu1 }
 0x1e0   : > { %5568 = vmatmul.mubr.msk.f32.vlgmr.msra.gmra.mxu0 %vm1147_vm5, %v1123_v50  ;;  %5587 = vmatmul.mubr.msk.f32.vlgmr.msra.gmra.mxu1 %vm1147_vm5, %v1018_v49 }
 0x1e1   : > { %5602 = vmatpush3.msk.msra.mxu0 %vm948_vm3, %v6628_v15  ;;  %v5521_v47 = vpop.f32.mrf.mxu0  ;;  %v5550_v51 = vpop.f32.mrf.mxu1  ;;  %5570 = vmatprep.mubr.msk.f32.mxu0 %vm6344_vm2, %v6343_v2 }
 0x1e2   : > { %5603 = vmatprep.subr.mxu0 %v6343_v2  ;;  %5589 = vmatprep.mubr.msk.f32.mxu1 %vm6344_vm2, %v6343_v2 }
 0x1e3   : > { %5604 = vmatpush3.msra.mxu0 %v6632_v22  ;;  %v1023_v52 = vpop.f32.mrf.mxu0  ;;  %v1128_v53 = vpop.f32.mrf.mxu1  ;;  %5631 = vmatpush3.msra.mxu1 %v4745_v19 }
 0x1e4   : > { %5605 = vmatprep.subr.mxu0 %v6343_v2  ;;  %5571 = vmatmul.mubr.msk.f32.gmra.mxu0 %vm1147_vm5, %v1128_v53 }
 0x1e5   : > { %5590 = vmatmul.mubr.msk.f32.gmra.mxu1 %vm1147_vm5, %v1023_v52  ;;  %5606 = vmatpush3.msra.mxu0 %v6642_v27  ;;  %v5524_v54 = vpop.f32.mrf.mxu0  ;;  %v5553_v55 = vpop.f32.mrf.mxu1 }
 0x1e6   : > { %5607 = vmatprep.subr.mxu0 %v6343_v2  ;;  %5573 = vmatprep.mubr.msk.f32.mxu0 %vm6344_vm2, %v6343_v2 }
 0x1e7   : > { %5608 = vmatpush3.msra.mxu0 %v6648_v28  ;;  %v1028_v56 = vpop.f32.mrf.mxu0  ;;  %v1133_v57 = vpop.f32.mrf.mxu1  ;;  %5592 = vmatprep.mubr.msk.f32.mxu1 %vm6344_vm2, %v6343_v2 }
 0x1e8   : > { %5609 = vmatprep.subr.mxu0 %v6343_v2  ;;  %5574 = vmatmul.mubr.msk.f32.gmra.mxu0 %vm1147_vm5, %v1133_v57 }
 0x1e9   : > { %5593 = vmatmul.mubr.msk.f32.gmra.mxu1 %vm1147_vm5, %v1028_v56  ;;  %5610 = vmatpush3.msra.mxu0 %v6654_v31  ;;  %v5527_v60 = vpop.f32.mrf.mxu0  ;;  %v5556_v61 = vpop.f32.mrf.mxu1 }
 0x1ea   : > { %5611 = vmatprep.subr.mxu0 %v6343_v2  ;;  %5576 = vmatprep.mubr.msk.f32.mxu0 %vm6344_vm2, %v6343_v2 }
 0x1eb   : > { %5612 = vmatpush3.msra.mxu0 %v6660_v32  ;;  %v1033_v0 = vpop.f32.mrf.mxu0  ;;  %v1138_v1 = vpop.f32.mrf.mxu1  ;;  %5595 = vmatprep.mubr.msk.f32.mxu1 %vm6344_vm2, %v6343_v2 }
 0x1ec   : > { %5613 = vmatprep.subr.mxu0 %v6343_v2  ;;  %5577 = vmatmul.mubr.msk.f32.gmra.mxu0 %vm1147_vm5, %v1138_v1 }
 0x1ed   : > { %5596 = vmatmul.mubr.msk.f32.gmra.mxu1 %vm1147_vm5, %v1033_v0  ;;  %5614 = vmatpush3.msra.mxu0 %v6667_v33  ;;  %v5530_v5 = vpop.f32.mrf.mxu0  ;;  %v5559_v6 = vpop.f32.mrf.mxu1 }
 0x1ee   : > { %5579 = vmatprep.mubr.msk.f32.mxu0 %vm6344_vm2, %v6343_v2  ;;  %5598 = vmatprep.mubr.msk.f32.mxu1 %vm6344_vm2, %v6343_v2 }
 0x1ef   : > { %v1038_v7 = vpop.f32.mrf.mxu0  ;;  %v1143_v8 = vpop.f32.mrf.mxu1  ;;  %5649 = vmatprep.subr.mxu0 %v6343_v2  ;;  %5632 = vmatprep.subr.mxu1 %v6343_v2 }
 0x1f0   : > { %5580 = vmatmul.mubr.msk.f32.gmra.mxu0 %vm1147_vm5, %v1143_v8  ;;  %5633 = vmatpush3.msra.mxu1 %v4744_v20  ;;  %v4748_v8 = vld [vmem:[%s7941_s6 + $0x20] sm:$0xff] }
 0x1f1   : > { %5599 = vmatmul.mubr.msk.f32.gmra.mxu1 %vm1147_vm5, %v1038_v7  ;;  %v5562_v9 = vpop.f32.mrf.mxu1  ;;  %5615 = vmatprep.mubr.msk.f32.mxu0 %vm6344_vm2, %v6343_v2  ;;  %v5533_v3 = vpop.f32.mrf.mxu0  ;;  %v394_v7 = vld [vmem:[%s7941_s6] sm:$0xff] }
 0x1f2   : > { %5634 = vmatprep.mubr.msk.f32.mxu1 %vm6344_vm2, %v6343_v2  ;;  %5678 = vmatprep.subr.mxu1 %v6343_v2 }
 0x1f4   : > { %5616 = vmatmul.mubr.msk.f32.vlgmr.msra.gmra.mxu0 %vm932_vm4, %v4732_v10 }
 0x1f5   : > { %5650 = vmatpush3.msk.msra.mxu0 %vm948_vm3, %v6628_v15  ;;  %5618 = vmatprep.mubr.msk.f32.mxu0 %vm6344_vm2, %v6343_v2  ;;  %v4738_v15 = vld [vmem:[%s7938_s3 + $0x80] sm:$0xff] }
 0x1f6   : > { %5651 = vmatprep.subr.mxu0 %v6343_v2 }
 0x1f7   : > { %5652 = vmatpush3.msra.mxu0 %v6632_v22 }
 0x1f8   : > { %5653 = vmatprep.subr.mxu0 %v6343_v2  ;;  %5619 = vmatmul.mubr.msk.f32.gmra.mxu0 %vm932_vm4, %v4733_v4 }
 0x1f9   : > { %5654 = vmatpush3.msra.mxu0 %v6642_v27  ;;  %5621 = vmatprep.mubr.msk.f32.mxu0 %vm6344_vm2, %v6343_v2 }
 0x1fa   : > { %5655 = vmatprep.subr.mxu0 %v6343_v2 }
 0x1fb   : > { %5656 = vmatpush3.msra.mxu0 %v6648_v28 }
 0x1fc   : > { %5657 = vmatprep.subr.mxu0 %v6343_v2  ;;  %5622 = vmatmul.mubr.msk.f32.gmra.mxu0 %vm932_vm4, %v4734_v11 }
 0x1fd   : > { %5658 = vmatpush3.msra.mxu0 %v6654_v31  ;;  %5624 = vmatprep.mubr.msk.f32.mxu0 %vm6344_vm2, %v6343_v2 }
 0x1fe   : > { %5659 = vmatprep.subr.mxu0 %v6343_v2 }
 0x1ff   : > { %5660 = vmatpush3.msra.mxu0 %v6660_v32 }
 0x200   : > { %5661 = vmatprep.subr.mxu0 %v6343_v2  ;;  %5625 = vmatmul.mubr.msk.f32.gmra.mxu0 %vm932_vm4, %v4735_v12 }
 0x201   : > { %5662 = vmatpush3.msra.mxu0 %v6667_v33  ;;  %5627 = vmatprep.mubr.msk.f32.mxu0 %vm6344_vm2, %v6343_v2 }
 0x204   : > { %5628 = vmatmul.mubr.msk.f32.gmra.mxu0 %vm932_vm4, %v4736_v13 }
 0x205   : > { %5663 = vmatprep.mubr.msk.f32.mxu0 %vm6344_vm2, %v6343_v2 }
 0x208   : > { %5664 = vmatmul.mubr.msk.f32.vlgmr.msra.gmra.mxu0 %vm932_vm4, %v4737_v14 }
 0x209   : > { %5666 = vmatprep.mubr.msk.f32.mxu0 %vm6344_vm2, %v6343_v2 }
 0x20c   : > { %5667 = vmatmul.mubr.msk.f32.gmra.mxu0 %vm932_vm4, %v4738_v15 }
 0x20d   : > { %5669 = vmatprep.mubr.msk.f32.mxu0 %vm6344_vm2, %v6343_v2 }
 0x210   : > { %5670 = vmatmul.mubr.msk.f32.gmra.mxu0 %vm932_vm4, %v4739_v62 }
 0x211   : > { %5672 = vmatprep.mubr.msk.f32.mxu0 %vm6344_vm2, %v6343_v2 }
 0x214   : > { %5673 = vmatmul.mubr.msk.f32.gmra.mxu0 %vm932_vm4, %v4740_v63 }
 0x215   : > { %5675 = vmatprep.mubr.msk.f32.mxu0 %vm6344_vm2, %v6343_v2 }
 0x218   : > { %5676 = vmatmul.mubr.msk.f32.gmra.mxu0 %vm932_vm4, %v4741_v16 }
 0x219   : > { %5707 = vmatprep.mubr.msk.f32.mxu0 %vm1804_vm6, %v394_v7 }
 0x2a0   : > { %v1229_v21 = vpop.f32.mrf.mxu0  ;;  %v1334_v22 = vpop.f32.mrf.mxu1 }
 0x2a1   : > { %v6878_v24 = vadd.f32 %v1334_v22, %v1229_v21 }
 0x2a2   : > { %v5569_v58 = vpop.f32.mrf.mxu0  ;;  %v5588_v59 = vpop.f32.mrf.mxu1 }
 0x2a4   : > { %v1234_v23 = vpop.f32.mrf.mxu0 }
 0x2a5   : > { %v1339_v25 = vpop.f32.mrf.mxu1 }
 0x2a6   : > { %v6880_v26 = vadd.f32 %v1339_v25, %v1234_v23  ;;  %v5572_v27 = vpop.f32.mrf.mxu0 }
 0x2a7   : > { %v5591_v17 = vpop.f32.mrf.mxu1 }
 0x2a8   : > { %v1239_v18 = vpop.f32.mrf.mxu0 }
 0x2a9   : > { %v1344_v28 = vpop.f32.mrf.mxu1 }
 0x2aa   : > { %v6882_v29 = vadd.f32 %v1344_v28, %v1239_v18  ;;  %v5575_v30 = vpop.f32.mrf.mxu0 }
 0x2ab   : > { %v5594_v31 = vpop.f32.mrf.mxu1 }
 0x2ac   : > { %v1244_v32 = vpop.f32.mrf.mxu0 }
 0x2ad   : > { %v1349_v33 = vpop.f32.mrf.mxu1 }
 0x2ae   : > { %v6884_v34 = vadd.f32 %v1349_v33, %v1244_v32  ;;  %v5578_v36 = vpop.f32.mrf.mxu0  ;;  %v4849_v32 = vld [vmem:[%s7940_s5] ss:$0 sm:$0xff] }
 0x2af   : > { %v5597_v35 = vpop.f32.mrf.mxu1 }
 0x2b0   : > { %v1249_v37 = vpop.f32.mrf.mxu0 }
 0x2b1   : > { %v1354_v38 = vpop.f32.mrf.mxu1 }
 0x2b2   : > { %v6886_v39 = vadd.f32 %v1354_v38, %v1249_v37  ;;  %v5581_v40 = vpop.f32.mrf.mxu0 }
 0x2b3   : > { %v5600_v42 = vpop.f32.mrf.mxu1 }
 0x2b4   : > { %v1439_v43 = vpop.f32.mrf.mxu0 }
 0x2b5   : > { %5635 = vmatmul.mubr.msk.f32.vlgmr.msra.gmra.mxu1 %vm1147_vm5, %v1439_v43 }
 0x2b6   : > { %v5617_v45 = vpop.f32.mrf.mxu0  ;;  %5637 = vmatprep.mubr.msk.f32.mxu1 %vm6344_vm2, %v6343_v2  ;;  %5679 = vmatpush3.msra.mxu1 %v4747_v41 }
 0x2b7   : > { %5680 = vmatprep.subr.mxu1 %v6343_v2  ;;  %v4749_v45 = vld [vmem:[%s7941_s6 + $0x28] sm:$0xff] }
 0x2b8   : > { %v1444_v46 = vpop.f32.mrf.mxu0  ;;  %5681 = vmatpush3.msra.mxu1 %v4746_v44  ;;  %v395_v44 = vld [vmem:[%s7941_s6 + $0x8] sm:$0xff] }
 0x2b9   : > { %5638 = vmatmul.mubr.msk.f32.gmra.mxu1 %vm1147_vm5, %v1444_v46  ;;  %v4763_v46 = vld [vmem:[%s7942_s7 + $0x38] sm:$0xff] }
 0x2ba   : > { %v5620_v48 = vpop.f32.mrf.mxu0  ;;  %5640 = vmatprep.mubr.msk.f32.mxu1 %vm6344_vm2, %v6343_v2 }
 0x2bb   : > { %v396_v48 = vld [vmem:[%s7941_s6 + $0x10] sm:$0xff] }
 0x2bc   : > { %v1449_v49 = vpop.f32.mrf.mxu0 }
 0x2bd   : > { %5641 = vmatmul.mubr.msk.f32.gmra.mxu1 %vm1147_vm5, %v1449_v49  ;;  %v4750_v49 = vld [vmem:[%s7941_s6 + $0x30] sm:$0xff] }
 0x2be   : > { %v5623_v50 = vpop.f32.mrf.mxu0  ;;  %5643 = vmatprep.mubr.msk.f32.mxu1 %vm6344_vm2, %v6343_v2 }
 0x2bf   : > { %v4762_v50 = vld [vmem:[%s7942_s7 + $0x30] sm:$0xff] }
 0x2c0   : > { %v1454_v47 = vpop.f32.mrf.mxu0 }
 0x2c1   : > { %5644 = vmatmul.mubr.msk.f32.gmra.mxu1 %vm1147_vm5, %v1454_v47  ;;  %v416_v47 = vld [vmem:[%s7942_s7 + $0x18] sm:$0xff] }
 0x2c2   : > { %v5626_v51 = vpop.f32.mrf.mxu0  ;;  %5646 = vmatprep.mubr.msk.f32.mxu1 %vm6344_vm2, %v6343_v2 }
 0x2c3   : > { %v4751_v51 = vld [vmem:[%s7941_s6 + $0x38] sm:$0x1] }
 0x2c4   : > { %v1459_v52 = vpop.f32.mrf.mxu0 }
 0x2c5   : > { %5647 = vmatmul.mubr.msk.f32.gmra.mxu1 %vm1147_vm5, %v1459_v52  ;;  %v397_v52 = vld [vmem:[%s7941_s6 + $0x18] sm:$0x1] }
 0x2c6   : > { %v5629_v53 = vpop.f32.mrf.mxu0  ;;  %5682 = vmatprep.mubr.msk.f32.mxu1 %vm6344_vm2, %v6343_v2 }
 0x2c7   : > { %v4761_v53 = vld [vmem:[%s7942_s7 + $0x28] sm:$0xff] }
 0x2c8   : > { %v1654_v54 = vpop.f32.mrf.mxu0 }
 0x2c9   : > { %5683 = vmatmul.mubr.msk.f32.vlgmr.msra.gmra.mxu1 %vm1147_vm5, %v1654_v54  ;;  %v4760_v54 = vld [vmem:[%s7942_s7 + $0x20] sm:$0xff] }
 0x2ca   : > { %v5665_v55 = vpop.f32.mrf.mxu0  ;;  %5685 = vmatprep.mubr.msk.f32.mxu1 %vm6344_vm2, %v6343_v2 }
 0x2cb   : > { %v415_v55 = vld [vmem:[%s7942_s7 + $0x10] sm:$0xff] }
 0x2cc   : > { %v1659_v56 = vpop.f32.mrf.mxu0 }
 0x2cd   : > { %5686 = vmatmul.mubr.msk.f32.gmra.mxu1 %vm1147_vm5, %v1659_v56  ;;  %v414_v56 = vld [vmem:[%s7942_s7 + $0x8] sm:$0xff] }
 0x2ce   : > { %v5668_v57 = vpop.f32.mrf.mxu0  ;;  %5688 = vmatprep.mubr.msk.f32.mxu1 %vm6344_vm2, %v6343_v2 }
 0x2cf   : > { %v413_v57 = vld [vmem:[%s7942_s7] sm:$0xff] }
 0x2d0   : > { %v1664_v60 = vpop.f32.mrf.mxu0 }
 0x2d1   : > { %5689 = vmatmul.mubr.msk.f32.gmra.mxu1 %vm1147_vm5, %v1664_v60  ;;  %v4767_v60 = vld [vmem:[%s7942_s7 + $0x58] sm:$0xff] }
 0x2d2   : > { %v5671_v61 = vpop.f32.mrf.mxu0  ;;  %5691 = vmatprep.mubr.msk.f32.mxu1 %vm6344_vm2, %v6343_v2 }
 0x2d4   : > { %v1669_v0 = vpop.f32.mrf.mxu0 }
 0x2d5   : > { %5692 = vmatmul.mubr.msk.f32.gmra.mxu1 %vm1147_vm5, %v1669_v0 }
 0x2d6   : > { %v5674_v1 = vpop.f32.mrf.mxu0  ;;  %5694 = vmatprep.mubr.msk.f32.mxu1 %vm6344_vm2, %v6343_v2 }
 0x2d8   : > { %v1674_v5 = vpop.f32.mrf.mxu0 }
 0x2d9   : > { %5695 = vmatmul.mubr.msk.f32.gmra.mxu1 %vm1147_vm5, %v1674_v5 }
 0x2da   : > { %v5677_v6 = vpop.f32.mrf.mxu0  ;;  %5723 = vmatprep.mubr.msk.f32.mxu1 %vm1804_vm6, %v4748_v8 }
 0x2db   : > { %v4766_v6 = vld [vmem:[%s7942_s7 + $0x50] sm:$0xff] }
 0x375   : > { %v1544_v9 = vpop.f32.mrf.mxu1 }
 0x376   : > { %v1568_v36 = vadd.f32 %v1544_v9, %v6878_v24 }
 0x377   : > { %v5636_v10 = vpop.f32.mrf.mxu1 }
 0x378   : > { %v4765_v10 = vld [vmem:[%s7942_s7 + $0x48] sm:$0xff] }
 0x379   : > { %v1549_v3 = vpop.f32.mrf.mxu1 }
 0x37a   : > { %v1569_v28 = vadd.f32 %v1549_v3, %v6880_v26 }
 0x37b   : > { %v5639_v4 = vpop.f32.mrf.mxu1 }
 0x37c   : > { %v4764_v4 = vld [vmem:[%s7942_s7 + $0x40] sm:$0xff] }
 0x37d   : > { %v1554_v11 = vpop.f32.mrf.mxu1 }
 0x37e   : > { %v1570_v25 = vadd.f32 %v1554_v11, %v6882_v29  ;;  %v4752_v11 = vld [vmem:[%s7941_s6 + $0x40] sm:$0xff] }
 0x37f   : > { %v5642_v12 = vpop.f32.mrf.mxu1 }
 0x380   : > { %v4753_v12 = vld [vmem:[%s7941_s6 + $0x48] sm:$0xff] }
 0x381   : > { %v1559_v13 = vpop.f32.mrf.mxu1 }
 0x382   : > { %v1571_v59 = vadd.f32 %v1559_v13, %v6884_v34  ;;  %v4754_v13 = vld [vmem:[%s7941_s6 + $0x50] sm:$0xff] }
 0x383   : > { %v5645_v14 = vpop.f32.mrf.mxu1 }
 0x384   : > { %v4755_v14 = vld [vmem:[%s7941_s6 + $0x58] sm:$0x1] }
 0x385   : > { %v1564_v15 = vpop.f32.mrf.mxu1 }
 0x386   : > { %v1572_v27 = vadd.f32 %v1564_v15, %v6886_v39 }
 0x387   : > { %v5648_v62 = vpop.f32.mrf.mxu1 }
 0x389   : > { %v1759_v63 = vpop.f32.mrf.mxu1 }
 0x38a   : > { %v1783_v29 = vadd.f32 %v1759_v63, %v1568_v36  ;;  %v6258_v36 = vld [vmem:[%s7936_s1 + $0x28] sm:$0xff] }
 0x38b   : > { %v5684_v16 = vpop.f32.mrf.mxu1 }
 0x38c   : > { %v1794_v24 = vadd.f32 %v4849_v32, %v1783_v29  ;;  %v4769_v29 = vld [vmem:[%s7942_s7 + $0x68] sm:$0xff] }
 0x38d   : > { %v1764_v19 = vpop.f32.mrf.mxu1 }
 0x38e   : > { %v1784_v35 = vadd.f32 %v1764_v19, %v1569_v28  ;;  %v6963_v43 = vmax.f32 %v1794_v24, 0.0  ;;  %v4757_v28 = vld [vmem:[%s7941_s6 + $0x68] sm:$0xff]  ;;  %v6261_v24 = vld [vmem:[%s7936_s1 + $0x70] sm:$0xff] }
 0x38f   : > { %v5687_v20 = vpop.f32.mrf.mxu1 }
 0x390   : > { %v1795_v40 = vadd.f32 %v4849_v32, %v1784_v35  ;;  %v6259_v35 = vld [vmem:[%s7936_s1 + $0x20] sm:$0xff] }
 0x391   : > { %v1769_v21 = vpop.f32.mrf.mxu1 }
 0x392   : > { %v1785_v30 = vadd.f32 %v1769_v21, %v1570_v25  ;;  %v6957_v42 = vmax.f32 %v1795_v40, 0.0  ;;  %v6260_v40 = vld [vmem:[%s7936_s1 + $0x78] sm:$0x7] }
 0x393   : > { %v5690_v22 = vpop.f32.mrf.mxu1 }
 0x394   : > { %v1796_v38 = vadd.f32 %v4849_v32, %v1785_v30  ;;  %v4758_v30 = vld [vmem:[%s7941_s6 + $0x70] sm:$0xff] }
 0x395   : > { %v1774_v58 = vpop.f32.mrf.mxu1 }
 0x396   : > { %v1786_v17 = vadd.f32 %v1774_v58, %v1571_v59  ;;  %v6951_v26 = vmax.f32 %v1796_v38, 0.0  ;;  %v4768_v38 = vld [vmem:[%s7942_s7 + $0x60] sm:$0xff] }
 0x397   : > { %v5693_v23 = vpop.f32.mrf.mxu1 }
 0x398   : > { %v1797_v34 = vadd.f32 %v4849_v32, %v1786_v17 }
 0x399   : > { %v1779_v18 = vpop.f32.mrf.mxu1 }
 0x39a   : > { %v1787_v31 = vadd.f32 %v1779_v18, %v1572_v27  ;;  %v6941_v41 = vmax.f32 %v1797_v34, 0.0  ;;  %v4756_v18 = vld [vmem:[%s7941_s6 + $0x60] sm:$0xff]  ;;  %v4771_v34 = vld [vmem:[%s7942_s7 + $0x78] sm:$0xff] }
 0x39b   : > { %v5696_v33 = vpop.f32.mrf.mxu1 }
 0x39c   : > { %v1798_v37 = vadd.f32 %v4849_v32, %v1787_v31  ;;  %v4759_v31 = vld [vmem:[%s7941_s6 + $0x78] sm:$0x1]  ;;  %v6257_v33 = vld [vmem:[%s7936_s1 + $0x30] sm:$0xff] }
 0x39d   : > { %v6256_v32 = vld [vmem:[%s7936_s1 + $0x38] sm:$0x7] }
 0x39e   : > { %v6939_v39 = vmax.f32 %v1798_v37, 0.0  ;;  %v4770_v37 = vld [vmem:[%s7942_s7 + $0x70] sm:$0xff] }
 0x3a0   : > { %5697 = vmatprep.subr.msk.mxu0 %vm1817_vm7, %v6939_v39  ;;  %5713 = vmatprep.subr.msk.mxu1 %vm1817_vm7, %v6939_v39 }
 0x3a1   : > { %5698 = vmatpush3.msk.msra.mxu0 %vm1817_vm7, %v6939_v39  ;;  %5714 = vmatpush3.msk.msra.mxu1 %vm1817_vm7, %v6939_v39 }
 0x3a2   : > { %5699 = vmatprep.subr.mxu0 %v6941_v41  ;;  %5715 = vmatprep.subr.mxu1 %v6941_v41 }
 0x3a3   : > { %5700 = vmatpush3.msra.mxu0 %v6941_v41  ;;  %5716 = vmatpush3.msra.mxu1 %v6941_v41 }
 0x3a4   : > { %5701 = vmatprep.subr.mxu0 %v6951_v26  ;;  %5717 = vmatprep.subr.mxu1 %v6951_v26 }
 0x3a5   : > { %5702 = vmatpush3.msra.mxu0 %v6951_v26  ;;  %5718 = vmatpush3.msra.mxu1 %v6951_v26 }
 0x3a6   : > { %5703 = vmatprep.subr.mxu0 %v6957_v42  ;;  %5719 = vmatprep.subr.mxu1 %v6957_v42 }
 0x3a7   : > { %5704 = vmatpush3.msra.mxu0 %v6957_v42  ;;  %5720 = vmatpush3.msra.mxu1 %v6957_v42 }
 0x3a8   : > { %5705 = vmatprep.subr.mxu0 %v6963_v43  ;;  %5721 = vmatprep.subr.mxu1 %v6963_v43 }
 0x3a9   : > { %5706 = vmatpush3.msra.mxu0 %v6963_v43  ;;  %5722 = vmatpush3.msra.mxu1 %v6963_v43 }
 0x3aa   : > { %5708 = vmatmul.mubr.msk.f32.vlgmr.msra.gmra.mxu0 %vm1804_vm6, %v395_v44  ;;  %5724 = vmatmul.mubr.msk.f32.vlgmr.msra.gmra.mxu1 %vm1804_vm6, %v4749_v45  ;;  %v7181_v44 = vld [vmem:[%s6445_s11 + $0x50] sm:$0xff]  ;;  %v7188_v45 = vld [vmem:[%s6445_s11 + $0x58] sm:$0xff] }
 0x3ab   : > { %5729 = vmatprep.subr.mxu0 %v4763_v46  ;;  %5710 = vmatprep.mubr.msk.f32.mxu0 %vm1804_vm6, %v396_v48  ;;  %v7202_v48 = vld [vmem:[%s6445_s11 + $0x68] sm:$0x1] }
 0x3ac   : > { %5730 = vmatpush3.msra.mxu0 %v4763_v46  ;;  %5726 = vmatprep.mubr.msk.f32.mxu1 %vm1804_vm6, %v4750_v49  ;;  %v7195_v46 = vld [vmem:[%s6445_s11 + $0x60] sm:$0xff] }
 0x3ad   : > { %5731 = vmatprep.subr.mxu0 %v4762_v50  ;;  %5743 = vmatprep.subr.mxu1 %v416_v47 }
 0x3ae   : > { %5732 = vmatpush3.msra.mxu0 %v4762_v50  ;;  %5727 = vmatmul.mubr.msk.f32.gmra.mxu1 %vm1804_vm6, %v4751_v51 }
 0x3af   : > { %5711 = vmatmul.mubr.msk.f32.gmra.mxu0 %vm1804_vm6, %v397_v52  ;;  %5733 = vmatprep.subr.mxu0 %v4761_v53 }
 0x3b0   : > { %5734 = vmatpush3.msra.mxu0 %v4761_v53  ;;  %5744 = vmatpush3.msra.mxu1 %v416_v47 }
 0x3b1   : > { %5735 = vmatprep.subr.mxu0 %v4760_v54  ;;  %5745 = vmatprep.subr.mxu1 %v415_v55 }
 0x3b2   : > { %5736 = vmatpush3.msra.mxu0 %v4760_v54  ;;  %5746 = vmatpush3.msra.mxu1 %v415_v55 }
 0x3b3   : > { %5757 = vmatprep.subr.msk.mxu0 %vm1817_vm7, %v6939_v39  ;;  %5747 = vmatprep.subr.mxu1 %v414_v56 }
 0x3b4   : > { %5748 = vmatpush3.msra.mxu1 %v414_v56 }
 0x3b5   : > { %5749 = vmatprep.subr.mxu1 %v413_v57 }
 0x3b6   : > { %5750 = vmatpush3.msra.mxu1 %v413_v57 }
 0x3b7   : > { %5773 = vmatprep.subr.mxu1 %v4767_v60 }
 0x46a   : > { %v5709_v61 = vpop.f32.mrf.mxu0  ;;  %v5725_v0 = vpop.f32.mrf.mxu1 }
 0x46c   : > { %v1887_v1 = vpop.f32.mrf.mxu0  ;;  %v1984_v5 = vpop.f32.mrf.mxu1 }
 0x46d   : > { %5737 = vmatprep.mubr.msk.f32.mxu0 %vm2003_vm8, %v1984_v5  ;;  %5751 = vmatprep.mubr.msk.f32.mxu1 %vm2003_vm8, %v1887_v1  ;;  %v6264_v1 = vld [vmem:[%s7936_s1 + $0x18] sm:$0x7] }
 0x46e   : > { %v5728_v7 = vpop.f32.mrf.mxu1  ;;  %5738 = vmatmul.mubr.msk.f32.vlgmr.msra.gmra.mxu0 %vm2003_vm8, %v5725_v0  ;;  %5752 = vmatmul.mubr.msk.f32.vlgmr.msra.gmra.mxu1 %vm2003_vm8, %v5709_v61 }
 0x46f   : > { %v5712_v8 = vpop.f32.mrf.mxu0  ;;  %5758 = vmatpush3.msk.msra.mxu0 %vm1817_vm7, %v6939_v39  ;;  %5774 = vmatpush3.msra.mxu1 %v4767_v60 }
 0x470   : > { %5759 = vmatprep.subr.mxu0 %v6941_v41  ;;  %5775 = vmatprep.subr.mxu1 %v4766_v6  ;;  %v1994_v9 = vpop.f32.mrf.mxu1 }
 0x471   : > { %v1897_v3 = vpop.f32.mrf.mxu0  ;;  %5760 = vmatpush3.msra.mxu0 %v6941_v41  ;;  %5776 = vmatpush3.msra.mxu1 %v4766_v6  ;;  %v6265_v6 = vld [vmem:[%s7936_s1 + $0x10] sm:$0xff] }
 0x472   : > { %5740 = vmatprep.mubr.msk.f32.mxu0 %vm2003_vm8, %v1994_v9  ;;  %5754 = vmatprep.mubr.msk.f32.mxu1 %vm2003_vm8, %v1897_v3  ;;  %v6268_v9 = vld [vmem:[%s7936_s1 + $0x58] sm:$0x7]  ;;  %v6270_v3 = vld [vmem:[%s7936_s1 + $0x48] sm:$0xff] }
 0x473   : > { %5761 = vmatprep.subr.mxu0 %v6951_v26  ;;  %5777 = vmatprep.subr.mxu1 %v4765_v10 }
 0x474   : > { %5741 = vmatmul.mubr.msk.f32.gmra.mxu0 %vm2003_vm8, %v5728_v7  ;;  %5755 = vmatmul.mubr.msk.f32.gmra.mxu1 %vm2003_vm8, %v5712_v8  ;;  %v6266_v7 = vld [vmem:[%s7936_s1 + $0x8] sm:$0xff]  ;;  %v6267_v8 = vld [vmem:[%s7936_s1] sm:$0xff] }
 0x475   : > { %5762 = vmatpush3.msra.mxu0 %v6951_v26  ;;  %5778 = vmatpush3.msra.mxu1 %v4765_v10  ;;  %v6269_v10 = vld [vmem:[%s7936_s1 + $0x50] sm:$0xff] }
 0x476   : > { %5763 = vmatprep.subr.mxu0 %v6957_v42  ;;  %5779 = vmatprep.subr.mxu1 %v4764_v4 }
 0x477   : > { %5764 = vmatpush3.msra.mxu0 %v6957_v42  ;;  %5780 = vmatpush3.msra.mxu1 %v4764_v4  ;;  %v6271_v4 = vld [vmem:[%s7936_s1 + $0x40] sm:$0xff] }
 0x478   : > { %5765 = vmatprep.subr.mxu0 %v6963_v43  ;;  %5787 = vmatprep.subr.msk.mxu1 %vm1817_vm7, %v6939_v39 }
 0x479   : > { %5766 = vmatpush3.msra.mxu0 %v6963_v43  ;;  %5767 = vmatprep.mubr.msk.f32.mxu0 %vm1804_vm6, %v4752_v11 }
 0x47a   : > { %5768 = vmatmul.mubr.msk.f32.vlgmr.msra.gmra.mxu0 %vm1804_vm6, %v4753_v12  ;;  %5803 = vmatprep.subr.mxu0 %v4771_v34 }
 0x47b   : > { %5770 = vmatprep.mubr.msk.f32.mxu0 %vm1804_vm6, %v4754_v13  ;;  %5804 = vmatpush3.msra.mxu0 %v4771_v34 }
 0x47c   : > { %5805 = vmatprep.subr.mxu0 %v4770_v37 }
 0x47d   : > { %5806 = vmatpush3.msra.mxu0 %v4770_v37 }
 0x47e   : > { %5771 = vmatmul.mubr.msk.f32.gmra.mxu0 %vm1804_vm6, %v4755_v14  ;;  %5807 = vmatprep.subr.mxu0 %v4769_v29 }
 0x47f   : > { %5808 = vmatpush3.msra.mxu0 %v4769_v29  ;;  %v4886_v29 = vld [vmem:[%s7943_s8] ss:$0 sm:$0xff] }
 0x480   : > { %5809 = vmatprep.subr.mxu0 %v4768_v38 }
 0x481   : > { %5810 = vmatpush3.msra.mxu0 %v4768_v38 }
 0x482   : > { %5817 = vmatprep.subr.mxu0 %v6343_v2 }
 0x52e   : > { %v5739_v15 = vpop.f32.mrf.mxu0  ;;  %v5753_v62 = vpop.f32.mrf.mxu1 }
 0x52f   : > { %v7071_v63 = vadd.f32 %v5753_v62, %v5739_v15 }
 0x530   : > { %v2082_v16 = vpop.f32.mrf.mxu0  ;;  %v2179_v19 = vpop.f32.mrf.mxu1 }
 0x531   : > { %v7073_v20 = vadd.f32 %v2179_v19, %v2082_v16 }
 0x534   : > { %v5742_v21 = vpop.f32.mrf.mxu0  ;;  %v5756_v22 = vpop.f32.mrf.mxu1 }
 0x535   : > { %v7075_v58 = vadd.f32 %v5756_v22, %v5742_v21 }
 0x536   : > { %v7077_v59 = vpop.f32.mrf.mxu0  ;;  %v2189_v49 = vpop.f32.mrf.mxu1 }
 0x537   : > { %v2190_v54 = vadd.f32 %v2189_v49, %v7077_v59 }
 0x53a   : > { %v5769_v23 = vpop.f32.mrf.mxu0 }
 0x53c   : > { %v2276_v25 = vpop.f32.mrf.mxu0 }
 0x53d   : > { %5781 = vmatprep.mubr.msk.f32.mxu1 %vm2003_vm8, %v2276_v25 }
 0x53e   : > { %v5772_v27 = vpop.f32.mrf.mxu0  ;;  %5782 = vmatmul.mubr.msk.f32.vlgmr.msra.gmra.mxu1 %vm2003_vm8, %v5769_v23 }
 0x53f   : > { %5788 = vmatpush3.msk.msra.mxu1 %vm1817_vm7, %v6939_v39  ;;  %v7143_v39 = vld [vmem:[%s6445_s11 + $0x38] sm:$0xff] }
 0x540   : > { %5789 = vmatprep.subr.mxu1 %v6941_v41  ;;  %v2286_v17 = vpop.f32.mrf.mxu0 }
 0x541   : > { %5790 = vmatpush3.msra.mxu1 %v6941_v41  ;;  %5784 = vmatprep.mubr.msk.f32.mxu1 %vm2003_vm8, %v2286_v17  ;;  %v7154_v41 = vld [vmem:[%s6445_s11 + $0x40] sm:$0xff] }
 0x542   : > { %5791 = vmatprep.subr.mxu1 %v6951_v26  ;;  %5785 = vmatmul.mubr.msk.f32.gmra.mxu1 %vm2003_vm8, %v5772_v27 }
 0x543   : > { %5792 = vmatpush3.msra.mxu1 %v6951_v26  ;;  %5797 = vmatprep.mubr.msk.f32.mxu1 %vm1804_vm6, %v4756_v18  ;;  %v6262_v26 = vld [vmem:[%s7936_s1 + $0x68] sm:$0xff] }
 0x544   : > { %5793 = vmatprep.subr.mxu1 %v6957_v42 }
 0x545   : > { %5794 = vmatpush3.msra.mxu1 %v6957_v42  ;;  %v7169_v42 = vld [vmem:[%s6445_s11 + $0x48] sm:$0xff] }
 0x546   : > { %5795 = vmatprep.subr.mxu1 %v6963_v43 }
 0x547   : > { %5796 = vmatpush3.msra.mxu1 %v6963_v43  ;;  %v6263_v43 = vld [vmem:[%s7936_s1 + $0x60] sm:$0xff] }
 0x548   : > { %5798 = vmatmul.mubr.msk.f32.vlgmr.msra.gmra.mxu1 %vm1804_vm6, %v4757_v28  ;;  %5846 = vmatprep.subr.mxu1 %v6343_v2 }
 0x549   : > { %5800 = vmatprep.mubr.msk.f32.mxu1 %vm1804_vm6, %v4758_v30  ;;  %5847 = vmatpush3.msk.msra.mxu1 %vm470_vm0, %v6256_v32 }
 0x54a   : > { %5848 = vmatprep.subr.mxu1 %v6343_v2 }
 0x54b   : > { %5849 = vmatpush3.msra.mxu1 %v6257_v33 }
 0x54c   : > { %5801 = vmatmul.mubr.msk.f32.gmra.mxu1 %vm1804_vm6, %v4759_v31  ;;  %5850 = vmatprep.subr.mxu1 %v6343_v2 }
 0x54d   : > { %5851 = vmatpush3.msra.mxu1 %v6258_v36  ;;  %5854 = vmatprep.mubr.msk.f32.mxu1 %vm6344_vm2, %v6343_v2 }
 0x54e   : > { %5852 = vmatprep.subr.mxu1 %v6343_v2 }
 0x54f   : > { %5853 = vmatpush3.msra.mxu1 %v6259_v35 }
 0x550   : > { %5904 = vmatprep.subr.mxu1 %v6343_v2  ;;  %5855 = vmatmul.mubr.msk.f32.vlgmr.msra.gmra.mxu1 %vm448_vm1, %v7143_v39 }
 0x551   : > { %5857 = vmatprep.mubr.msk.f32.mxu1 %vm6344_vm2, %v6343_v2  ;;  %5905 = vmatpush3.msk.msra.mxu1 %vm470_vm0, %v6260_v40 }
 0x552   : > { %5906 = vmatprep.subr.mxu1 %v6343_v2 }
 0x553   : > { %5907 = vmatpush3.msra.mxu1 %v6261_v24 }
 0x554   : > { %5858 = vmatmul.mubr.msk.f32.gmra.mxu1 %vm448_vm1, %v7154_v41  ;;  %5908 = vmatprep.subr.mxu1 %v6343_v2 }
 0x555   : > { %5860 = vmatprep.mubr.msk.f32.mxu1 %vm6344_vm2, %v6343_v2  ;;  %5909 = vmatpush3.msra.mxu1 %v6262_v26 }
 0x556   : > { %5910 = vmatprep.subr.mxu1 %v6343_v2 }
 0x557   : > { %5911 = vmatpush3.msra.mxu1 %v6263_v43 }
 0x558   : > { %5861 = vmatmul.mubr.msk.f32.gmra.mxu1 %vm448_vm1, %v7169_v42  ;;  %5962 = vmatprep.subr.mxu1 %v6343_v2 }
 0x559   : > { %5863 = vmatprep.mubr.msk.f32.mxu1 %vm6344_vm2, %v6343_v2 }
 0x55c   : > { %5864 = vmatmul.mubr.msk.f32.gmra.mxu1 %vm448_vm1, %v7181_v44 }
 0x55d   : > { %5866 = vmatprep.mubr.msk.f32.mxu1 %vm6344_vm2, %v6343_v2 }
 0x560   : > { %5867 = vmatmul.mubr.msk.f32.gmra.mxu1 %vm448_vm1, %v7188_v45 }
 0x561   : > { %5869 = vmatprep.mubr.msk.f32.mxu1 %vm6344_vm2, %v6343_v2 }
 0x564   : > { %5870 = vmatmul.mubr.msk.f32.gmra.mxu1 %vm448_vm1, %v7195_v46 }
 0x565   : > { %5872 = vmatprep.mubr.msk.f32.mxu1 %vm6344_vm2, %v6343_v2 }
 0x568   : > { %5873 = vmatmul.mubr.msk.f32.gmra.mxu1 %vm448_vm1, %v7202_v48 }
 0x569   : > { %5912 = vmatprep.mubr.msk.f32.mxu1 %vm6344_vm2, %v6343_v2 }
 0x56c   : > { %5913 = vmatmul.mubr.msk.f32.vlgmr.msra.gmra.mxu1 %vm448_vm1, %v7143_v39 }
 0x56d   : > { %5915 = vmatprep.mubr.msk.f32.mxu1 %vm6344_vm2, %v6343_v2 }
 0x570   : > { %5916 = vmatmul.mubr.msk.f32.gmra.mxu1 %vm448_vm1, %v7154_v41 }
 0x571   : > { %5918 = vmatprep.mubr.msk.f32.mxu1 %vm6344_vm2, %v6343_v2 }
 0x574   : > { %5919 = vmatmul.mubr.msk.f32.gmra.mxu1 %vm448_vm1, %v7169_v42 }
 0x575   : > { %5921 = vmatprep.mubr.msk.f32.mxu1 %vm6344_vm2, %v6343_v2 }
 0x578   : > { %5922 = vmatmul.mubr.msk.f32.gmra.mxu1 %vm448_vm1, %v7181_v44 }
 0x579   : > { %5924 = vmatprep.mubr.msk.f32.mxu1 %vm6344_vm2, %v6343_v2 }
 0x57c   : > { %5925 = vmatmul.mubr.msk.f32.gmra.mxu1 %vm448_vm1, %v7188_v45 }
 0x57d   : > { %5927 = vmatprep.mubr.msk.f32.mxu1 %vm6344_vm2, %v6343_v2 }
 0x580   : > { %5928 = vmatmul.mubr.msk.f32.gmra.mxu1 %vm448_vm1, %v7195_v46 }
 0x581   : > { %5930 = vmatprep.mubr.msk.f32.mxu1 %vm6344_vm2, %v6343_v2 }
 0x584   : > { %5931 = vmatmul.mubr.msk.f32.gmra.mxu1 %vm448_vm1, %v7202_v48 }
 0x585   : > { %5976 = vmatprep.mubr.msk.f32.mxu1 %vm6344_vm2, %v6343_v2 }
 0x5fe   : > { %v5783_v50 = vpop.f32.mrf.mxu1 }
 0x5ff   : > { %v7237_v47 = vadd.f32 %v5783_v50, %v7071_v63 }
 0x600   : > { %v2373_v51 = vpop.f32.mrf.mxu1 }
 0x601   : > { %v7240_v52 = vadd.f32 %v2373_v51, %v7073_v20 }
 0x602   : > { %v5786_v53 = vpop.f32.mrf.mxu1 }
 0x603   : > { %v7244_v55 = vadd.f32 %v5786_v53, %v7075_v58 }
 0x604   : > { %v2383_v56 = vpop.f32.mrf.mxu1 }
 0x605   : > { %v7246_v57 = vadd.f32 %v2383_v56, %v2190_v54 }
 0x608   : > { %v5799_v60 = vpop.f32.mrf.mxu1 }
 0x60a   : > { %v2474_v61 = vpop.f32.mrf.mxu1 }
 0x60b   : > { %5811 = vmatprep.mubr.msk.f32.mxu0 %vm2003_vm8, %v2474_v61 }
 0x60c   : > { %v5802_v0 = vpop.f32.mrf.mxu1  ;;  %5812 = vmatmul.mubr.msk.f32.vlgmr.msra.gmra.mxu0 %vm2003_vm8, %v5799_v60 }
 0x60d   : > { %5818 = vmatpush3.msk.msra.mxu0 %vm470_vm0, %v6264_v1 }
 0x60e   : > { %v2484_v5 = vpop.f32.mrf.mxu1  ;;  %5819 = vmatprep.subr.mxu0 %v6343_v2 }
 0x60f   : > { %5814 = vmatprep.mubr.msk.f32.mxu0 %vm2003_vm8, %v2484_v5  ;;  %5820 = vmatpush3.msra.mxu0 %v6265_v6 }
 0x610   : > { %5815 = vmatmul.mubr.msk.f32.gmra.mxu0 %vm2003_vm8, %v5802_v0  ;;  %5821 = vmatprep.subr.mxu0 %v6343_v2  ;;  %v2816_v11 = vpop.f32.mrf.mxu1 }
 0x611   : > { %5822 = vmatpush3.msra.mxu0 %v6266_v7  ;;  %5825 = vmatprep.mubr.msk.f32.mxu0 %vm6344_vm2, %v6343_v2 }
 0x612   : > { %5823 = vmatprep.subr.mxu0 %v6343_v2  ;;  %v5856_v12 = vpop.f32.mrf.mxu1 }
 0x613   : > { %5824 = vmatpush3.msra.mxu0 %v6267_v8 }
 0x614   : > { %5826 = vmatmul.mubr.msk.f32.vlgmr.msra.gmra.mxu0 %vm448_vm1, %v7143_v39  ;;  %5875 = vmatprep.subr.mxu0 %v6343_v2  ;;  %v7344_v13 = vpop.f32.mrf.mxu1 }
 0x615   : > { %5828 = vmatprep.mubr.msk.f32.mxu0 %vm6344_vm2, %v6343_v2  ;;  %5876 = vmatpush3.msk.msra.mxu0 %vm470_vm0, %v6268_v9 }
 0x616   : > { %5877 = vmatprep.subr.mxu0 %v6343_v2  ;;  %v5859_v14 = vpop.f32.mrf.mxu1 }
 0x617   : > { %5878 = vmatpush3.msra.mxu0 %v6269_v10 }
 0x618   : > { %5829 = vmatmul.mubr.msk.f32.gmra.mxu0 %vm448_vm1, %v7154_v41  ;;  %5879 = vmatprep.subr.mxu0 %v6343_v2  ;;  %v7346_v15 = vpop.f32.mrf.mxu1 }
 0x619   : > { %5831 = vmatprep.mubr.msk.f32.mxu0 %vm6344_vm2, %v6343_v2  ;;  %5880 = vmatpush3.msra.mxu0 %v6270_v3 }
 0x61a   : > { %5881 = vmatprep.subr.mxu0 %v6343_v2  ;;  %v5862_v62 = vpop.f32.mrf.mxu1 }
 0x61b   : > { %5882 = vmatpush3.msra.mxu0 %v6271_v4 }
 0x61c   : > { %5832 = vmatmul.mubr.msk.f32.gmra.mxu0 %vm448_vm1, %v7169_v42  ;;  %5933 = vmatprep.subr.mxu0 %v6343_v2  ;;  %v7348_v63 = vpop.f32.mrf.mxu1 }
 0x61d   : > { %5834 = vmatprep.mubr.msk.f32.mxu0 %vm6344_vm2, %v6343_v2 }
 0x61e   : > { %v5865_v16 = vpop.f32.mrf.mxu1 }
 0x620   : > { %5835 = vmatmul.mubr.msk.f32.gmra.mxu0 %vm448_vm1, %v7181_v44  ;;  %v7350_v19 = vpop.f32.mrf.mxu1 }
 0x621   : > { %5837 = vmatprep.mubr.msk.f32.mxu0 %vm6344_vm2, %v6343_v2 }
 0x622   : > { %v5868_v20 = vpop.f32.mrf.mxu1 }
 0x624   : > { %5838 = vmatmul.mubr.msk.f32.gmra.mxu0 %vm448_vm1, %v7188_v45  ;;  %v7352_v21 = vpop.f32.mrf.mxu1 }
 0x625   : > { %5840 = vmatprep.mubr.msk.f32.mxu0 %vm6344_vm2, %v6343_v2 }
 0x626   : > { %v5871_v22 = vpop.f32.mrf.mxu1 }
 0x628   : > { %5841 = vmatmul.mubr.msk.f32.gmra.mxu0 %vm448_vm1, %v7195_v46  ;;  %v7354_v58 = vpop.f32.mrf.mxu1 }
 0x629   : > { %5843 = vmatprep.mubr.msk.f32.mxu0 %vm6344_vm2, %v6343_v2 }
 0x62a   : > { %v5874_v59 = vpop.f32.mrf.mxu1 }
 0x62c   : > { %5844 = vmatmul.mubr.msk.f32.gmra.mxu0 %vm448_vm1, %v7202_v48  ;;  %v3030_v23 = vpop.f32.mrf.mxu1 }
 0x62d   : > { %5883 = vmatprep.mubr.msk.f32.mxu0 %vm6344_vm2, %v6343_v2 }
 0x62e   : > { %v5914_v25 = vpop.f32.mrf.mxu1 }
 0x630   : > { %5884 = vmatmul.mubr.msk.f32.vlgmr.msra.gmra.mxu0 %vm448_vm1, %v7143_v39  ;;  %v7356_v27 = vpop.f32.mrf.mxu1 }
 0x631   : > { %5886 = vmatprep.mubr.msk.f32.mxu0 %vm6344_vm2, %v6343_v2 }
 0x632   : > { %v5917_v17 = vpop.f32.mrf.mxu1 }
 0x634   : > { %5887 = vmatmul.mubr.msk.f32.gmra.mxu0 %vm448_vm1, %v7154_v41  ;;  %v7358_v18 = vpop.f32.mrf.mxu1 }
 0x635   : > { %5889 = vmatprep.mubr.msk.f32.mxu0 %vm6344_vm2, %v6343_v2 }
 0x636   : > { %v5920_v28 = vpop.f32.mrf.mxu1 }
 0x638   : > { %5890 = vmatmul.mubr.msk.f32.gmra.mxu0 %vm448_vm1, %v7169_v42  ;;  %v7360_v30 = vpop.f32.mrf.mxu1 }
 0x639   : > { %5892 = vmatprep.mubr.msk.f32.mxu0 %vm6344_vm2, %v6343_v2 }
 0x63a   : > { %v5923_v31 = vpop.f32.mrf.mxu1 }
 0x63c   : > { %5893 = vmatmul.mubr.msk.f32.gmra.mxu0 %vm448_vm1, %v7181_v44  ;;  %v7362_v32 = vpop.f32.mrf.mxu1 }
 0x63d   : > { %5895 = vmatprep.mubr.msk.f32.mxu0 %vm6344_vm2, %v6343_v2 }
 0x63e   : > { %v5926_v33 = vpop.f32.mrf.mxu1 }
 0x640   : > { %5896 = vmatmul.mubr.msk.f32.gmra.mxu0 %vm448_vm1, %v7188_v45  ;;  %v7364_v36 = vpop.f32.mrf.mxu1  ;;  %v7383_v45 = vld [vmem:[%s7937_s2] ss:$0 sm:$0xff] }
 0x641   : > { %5898 = vmatprep.mubr.msk.f32.mxu0 %vm6344_vm2, %v6343_v2  ;;  %v3031_v12 = vadd.f32 %v7383_v45, %v3030_v23  ;;  %v2822_v62 = vadd.f32 %v7383_v45, %v7344_v13  ;;  %v3036_v25 = vadd.f32 %v7383_v45, %v7356_v27  ;;  %v2827_v23 = vadd.f32 %v7383_v45, %v7346_v15 }
 0x642   : > { %v5929_v35 = vpop.f32.mrf.mxu1  ;;  %v3041_v13 = vadd.f32 %v7383_v45, %v7358_v18  ;;  %v2832_v27 = vadd.f32 %v7383_v45, %v7348_v63  ;;  %v3046_v18 = vadd.f32 %v7383_v45, %v7360_v30  ;;  %v3051_v30 = vadd.f32 %v7383_v45, %v7362_v32 }
 0x643   : > { %v3064_v22 = vmax.f32 %v3031_v12, 0.0  ;;  %v2851_v31 = vmax.f32 %v2822_v62, 0.0 }
 0x644   : > { %5899 = vmatmul.mubr.msk.f32.gmra.mxu0 %vm448_vm1, %v7195_v46  ;;  %v7366_v34 = vpop.f32.mrf.mxu1  ;;  %v2817_v46 = vadd.f32 %v7383_v45, %v2816_v11  ;;  %v3066_v15 = vmax.f32 %v3041_v13, 0.0 }
 0x645   : > { %5901 = vmatprep.mubr.msk.f32.mxu0 %vm6344_vm2, %v6343_v2 }
 0x646   : > { %v5932_v37 = vpop.f32.mrf.mxu1  ;;  %v2850_v54 = vmax.f32 %v2817_v46, 0.0 }
 0x648   : > { %5902 = vmatmul.mubr.msk.f32.gmra.mxu0 %vm448_vm1, %v7202_v48 }
 0x649   : > { %5947 = vmatprep.mubr.msk.f32.mxu0 %vm6344_vm2, %v6343_v2 }
 0x6cc   : > { %v5813_v38 = vpop.f32.mrf.mxu0 }
 0x6cd   : > { %v2591_v39 = vadd.f32 %v5813_v38, %v7237_v47  ;;  %v3065_v38 = vmax.f32 %v3036_v25, 0.0 }
 0x6ce   : > { %v2571_v40 = vpop.f32.mrf.mxu0 }
 0x6cf   : > { %v2601_v41 = vadd.f32 %v4886_v29, %v2591_v39  ;;  %v2590_v24 = vadd.f32 %v2571_v40, %v7240_v52 }
 0x6d0   : > { %v5816_v26 = vpop.f32.mrf.mxu0 }
 0x6d1   : > { %v2605_v42 = vmax.f32 %v2601_v41, 0.0  ;;  %v2600_v43 = vadd.f32 %v4886_v29, %v2590_v24  ;;  %v2593_v44 = vadd.f32 %v5816_v26, %v7244_v55 }
 0x6d2   : > { %v2581_v48 = vpop.f32.mrf.mxu0 }
 0x6d3   : > { %2610 = vst.msk [vmem:[%s7377_s26 + $0x8] sm:$0xff] %vm2608_vm9, %v2605_v42  ;;  %v2604_v49 = vmax.f32 %v2600_v43, 0.0  ;;  %v2603_v50 = vadd.f32 %v4886_v29, %v2593_v44  ;;  %v2592_v47 = vadd.f32 %v2581_v48, %v7246_v57  ;;  %v2852_v42 = vmax.f32 %v2827_v23, 0.0 }
 0x6d4   : > { %v2709_v51 = vpop.f32.mrf.mxu0 }
 0x6d5   : > { %2609 = vst.msk [vmem:[%s7377_s26] sm:$0xff] %vm2608_vm9, %v2604_v49  ;;  %v2607_v52 = vmax.f32 %v2603_v50, 0.0  ;;  %v2602_v53 = vadd.f32 %v4886_v29, %v2592_v47  ;;  %v2710_v55 = vadd.f32 %v7383_v45, %v2709_v51  ;;  %v2853_v47 = vmax.f32 %v2832_v27, 0.0 }
 0x6d6   : > { %v5827_v56 = vpop.f32.mrf.mxu0 }
 0x6d7   : > { %2613 = vst.msk [vmem:[%s7377_s26 + $0x18] sm:$0x1] %vm2612_vm10, %v2607_v52  ;;  %v2606_v60 = vmax.f32 %v2602_v53, 0.0  ;;  %v2743_v61 = vmax.f32 %v2710_v55, 0.0  ;;  %v2837_v52 = vadd.f32 %v7383_v45, %v7350_v19 }
 0x6d8   : > { %v2714_v0 = vpop.f32.mrf.mxu0 }
 0x6d9   : > { %2611 = vst.msk [vmem:[%s7377_s26 + $0x10] sm:$0xff] %vm2608_vm9, %v2606_v60  ;;  %v3071_v1 = vmax.f32 %v2743_v61, %v2850_v54  ;;  %v2715_v16 = vadd.f32 %v7383_v45, %v2714_v0  ;;  %v3067_v54 = vmax.f32 %v3046_v18, 0.0  ;;  %v2854_v19 = vmax.f32 %v2837_v52, 0.0  ;;  %v6275_v18 = vld [vmem:[%s7939_s4 + $0x18] sm:$0xff]  ;;  %v6283_v52 = vld [vmem:[%s7938_s3 + $0x40] sm:$0xff] }
 0x6da   : > { %v5830_v5 = vpop.f32.mrf.mxu0 }
 0x6db   : > { %v2744_v33 = vmax.f32 %v2715_v16, 0.0  ;;  %v2842_v5 = vadd.f32 %v7383_v45, %v7352_v21 }
 0x6dc   : > { %v2719_v57 = vpop.f32.mrf.mxu0 }
 0x6dd   : > { %v2720_v37 = vadd.f32 %v7383_v45, %v2719_v57  ;;  %v3072_v26 = vmax.f32 %v2744_v33, %v2851_v31  ;;  %v2855_v16 = vmax.f32 %v2842_v5, 0.0  ;;  %v6287_v5 = vld [vmem:[%s7939_s4 + $0x28] sm:$0xff] }
 0x6de   : > { %v5833_v6 = vpop.f32.mrf.mxu0 }
 0x6df   : > { %v2745_v44 = vmax.f32 %v2720_v37, 0.0 }
 0x6e0   : > { %v2724_v7 = vpop.f32.mrf.mxu0 }
 0x6e1   : > { %v2725_v46 = vadd.f32 %v7383_v45, %v2724_v7  ;;  %v3073_v56 = vmax.f32 %v2745_v44, %v2852_v42  ;;  %v6276_v44 = vld [vmem:[%s7939_s4 + $0x8] sm:$0xff] }
 0x6e2   : > { %v5836_v8 = vpop.f32.mrf.mxu0 }
 0x6e3   : > { %v2746_v60 = vmax.f32 %v2725_v46, 0.0  ;;  %v3068_v8 = vmax.f32 %v3051_v30, 0.0  ;;  %v6277_v46 = vld [vmem:[%s7938_s3 + $0x30] sm:$0xff] }
 0x6e4   : > { %v2729_v9 = vpop.f32.mrf.mxu0 }
 0x6e5   : > { %v2730_v53 = vadd.f32 %v7383_v45, %v2729_v9  ;;  %v3074_v32 = vmax.f32 %v2746_v60, %v2853_v47  ;;  %v6281_v47 = vld [vmem:[%s7938_s3 + $0x38] sm:$0xff] }
 0x6e6   : > { %v5839_v10 = vpop.f32.mrf.mxu0 }
 0x6e7   : > { %v2747_v7 = vmax.f32 %v2730_v53, 0.0  ;;  %v3056_v10 = vadd.f32 %v7383_v45, %v7364_v36  ;;  %v3061_v36 = vadd.f32 %v7383_v45, %v7366_v34  ;;  %v6284_v53 = vld [vmem:[%s7938_s3 + $0x18] sm:$0xff] }
 0x6e8   : > { %v2734_v3 = vpop.f32.mrf.mxu0 }
 0x6e9   : > { %v3069_v25 = vmax.f32 %v3056_v10, 0.0 }
 0x6ea   : > { %v5842_v4 = vpop.f32.mrf.mxu0 }
 0x6eb   : > { %v2735_v4 = vadd.f32 %v7383_v45, %v2734_v3 }
 0x6ec   : > { %v7396_v11 = vpop.f32.mrf.mxu0 }
 0x6ed   : > { %v2740_v3 = vadd.f32 %v7383_v45, %v7396_v11 }
 0x6ee   : > { %v5845_v14 = vpop.f32.mrf.mxu0 }
 0x6f0   : > { %v2923_v20 = vpop.f32.mrf.mxu0 }
 0x6f1   : > { %v2924_v59 = vadd.f32 %v7383_v45, %v2923_v20 }
 0x6f2   : > { %v5885_v17 = vpop.f32.mrf.mxu0 }
 0x6f3   : > { %v2957_v28 = vmax.f32 %v2924_v59, 0.0  ;;  %v2847_v59 = vadd.f32 %v7383_v45, %v7354_v58 }
 0x6f4   : > { %v2928_v35 = vpop.f32.mrf.mxu0 }
 0x6f5   : > { %v3078_v29 = vmax.f32 %v2957_v28, %v3064_v22  ;;  %v2929_v39 = vadd.f32 %v7383_v45, %v2928_v35  ;;  %v3075_v22 = vmax.f32 %v2747_v7, %v2854_v19  ;;  %v2748_v28 = vmax.f32 %v2735_v4, 0.0 }
 0x6f6   : > { %v5888_v40 = vpop.f32.mrf.mxu0  ;;  %v2856_v37 = vmax.f32 %v2847_v59, 0.0 }
 0x6f7   : > { %v7413_v41 = vmax.f32 %v3071_v1, %v3078_v29  ;;  %v2958_v24 = vmax.f32 %v2929_v39, 0.0  ;;  %v3070_v29 = vmax.f32 %v3061_v36, 0.0  ;;  %v3076_v58 = vmax.f32 %v2748_v28, %v2855_v16  ;;  %v6291_v36 = vld [vmem:[%s7938_s3 + $0x60] sm:$0xff]  ;;  %v6296_v28 = vld [vmem:[%s7938_s3 + $0x88] sm:$0xff] }
 0x6f8   : > { %v2933_v43 = vpop.f32.mrf.mxu0  ;;  %v2749_v39 = vmax.f32 %v2740_v3, 0.0  ;;  %v6297_v3 = vld [vmem:[%s7938_s3 + $0x90] sm:$0xff] }
 0x6f9   : > { %v3079_v48 = vmax.f32 %v2958_v24, %v3065_v38  ;;  %v2934_v49 = vadd.f32 %v7383_v45, %v2933_v43  ;;  %v6274_v43 = vld [vmem:[%s7938_s3] sm:$0xff] }
 0x6fa   : > { %v5891_v50 = vpop.f32.mrf.mxu0  ;;  %v3077_v11 = vmax.f32 %v2749_v39, %v2856_v37 }
 0x6fb   : > { %v7419_v51 = vmax.f32 %v3072_v26, %v3079_v48  ;;  %v2959_v63 = vmax.f32 %v2934_v49, 0.0  ;;  %v6278_v48 = vld [vmem:[%s7938_s3 + $0x8] sm:$0xff]  ;;  %v6279_v49 = vld [vmem:[%s7939_s4 + $0x10] sm:$0xff]  ;;  %v6280_v50 = vld [vmem:[%s7939_s4] sm:$0xff] }
 0x6fc   : > { %v2938_v55 = vpop.f32.mrf.mxu0 }
 0x6fd   : > { %v3080_v61 = vmax.f32 %v2959_v63, %v3066_v15  ;;  %v2939_v0 = vadd.f32 %v7383_v45, %v2938_v55  ;;  %v6282_v63 = vld [vmem:[%s7938_s3 + $0x10] sm:$0xff]  ;;  %v6286_v55 = vld [vmem:[%s7938_s3 + $0x20] sm:$0xf] }
 0x6fe   : > { %v5894_v1 = vpop.f32.mrf.mxu0 }
 0x6ff   : > { %v7429_v57 = vmax.f32 %v3073_v56, %v3080_v61  ;;  %v2960_v6 = vmax.f32 %v2939_v0, 0.0 }
 0x700   : > { %v2943_v9 = vpop.f32.mrf.mxu0 }
 0x701   : > { %v3081_v12 = vmax.f32 %v2960_v6, %v3067_v54  ;;  %v2944_v14 = vadd.f32 %v7383_v45, %v2943_v9  ;;  %v6285_v54 = vld [vmem:[%s7938_s3 + $0x48] sm:$0xf] }
 0x702   : > { %v5897_v62 = vpop.f32.mrf.mxu0 }
 0x703   : > { %v7435_v20 = vmax.f32 %v3074_v32, %v3081_v12  ;;  %v2961_v21 = vmax.f32 %v2944_v14, 0.0 }
 0x704   : > { %v2948_v17 = vpop.f32.mrf.mxu0 }
 0x705   : > { %v3082_v31 = vmax.f32 %v2961_v21, %v3068_v8  ;;  %v2949_v33 = vadd.f32 %v7383_v45, %v2948_v17  ;;  %v6288_v21 = vld [vmem:[%s7939_s4 + $0x20] sm:$0xff]  ;;  %v6290_v17 = vld [vmem:[%s7938_s3 + $0x58] sm:$0xff] }
 0x706   : > { %v5900_v23 = vpop.f32.mrf.mxu0 }
 0x707   : > { %v7444_v35 = vmax.f32 %v3075_v22, %v3082_v31  ;;  %v2962_v13 = vmax.f32 %v2949_v33, 0.0  ;;  %v6298_v31 = vld [vmem:[%s7938_s3 + $0x98] sm:$0xf]  ;;  %v6299_v33 = vld [vmem:[%s7941_s6] sm:$0xff] }
 0x708   : > { %v2953_v38 = vpop.f32.mrf.mxu0 }
 0x709   : > { %v3083_v40 = vmax.f32 %v2962_v13, %v3069_v25  ;;  %v2954_v27 = vadd.f32 %v7383_v45, %v2953_v38  ;;  %v6273_v45 = vld [vmem:[%s7938_s3 + $0x28] sm:$0xff]  ;;  %v6289_v25 = vld [vmem:[%s7938_s3 + $0x50] sm:$0xff] }
 0x70a   : > { %v5903_v34 = vpop.f32.mrf.mxu0 }
 0x70b   : > { %v7447_v24 = vmax.f32 %v3076_v58, %v3083_v40  ;;  %v2963_v26 = vmax.f32 %v2954_v27, 0.0 }
 0x70d   : > { %v3084_v42 = vmax.f32 %v2963_v26, %v3070_v29 }
 0x70f   : > { %v7449_v15 = vmax.f32 %v3077_v11, %v3084_v42 }
 0x711   : > { %5934 = vmatpush3.msk.msra.mxu0 %vm948_vm3, %v7449_v15  ;;  %5963 = vmatpush3.msk.msra.mxu1 %vm948_vm3, %v7449_v15 }
 0x712   : > { %5935 = vmatprep.subr.mxu0 %v6343_v2  ;;  %5964 = vmatprep.subr.mxu1 %v6343_v2 }
 0x713   : > { %5936 = vmatpush3.msra.mxu0 %v7447_v24  ;;  %5965 = vmatpush3.msra.mxu1 %v7447_v24 }
 0x714   : > { %5937 = vmatprep.subr.mxu0 %v6343_v2  ;;  %5966 = vmatprep.subr.mxu1 %v6343_v2 }
 0x715   : > { %5938 = vmatpush3.msra.mxu0 %v7444_v35  ;;  %5967 = vmatpush3.msra.mxu1 %v7444_v35 }
 0x716   : > { %5939 = vmatprep.subr.mxu0 %v6343_v2  ;;  %5968 = vmatprep.subr.mxu1 %v6343_v2 }
 0x717   : > { %5940 = vmatpush3.msra.mxu0 %v7435_v20  ;;  %5969 = vmatpush3.msra.mxu1 %v7435_v20 }
 0x718   : > { %5941 = vmatprep.subr.mxu0 %v6343_v2  ;;  %5970 = vmatprep.subr.mxu1 %v6343_v2 }
 0x719   : > { %5942 = vmatpush3.msra.mxu0 %v7429_v57  ;;  %5971 = vmatpush3.msra.mxu1 %v7429_v57 }
 0x71a   : > { %5943 = vmatprep.subr.mxu0 %v6343_v2  ;;  %5972 = vmatprep.subr.mxu1 %v6343_v2 }
 0x71b   : > { %5944 = vmatpush3.msra.mxu0 %v7419_v51  ;;  %5973 = vmatpush3.msra.mxu1 %v7419_v51 }
 0x71c   : > { %5945 = vmatprep.subr.mxu0 %v6343_v2  ;;  %5974 = vmatprep.subr.mxu1 %v6343_v2 }
 0x71d   : > { %5946 = vmatpush3.msra.mxu0 %v7413_v41  ;;  %5975 = vmatpush3.msra.mxu1 %v7413_v41 }
 0x71e   : > { %5977 = vmatmul.mubr.msk.f32.vlgmr.msra.gmra.mxu1 %vm932_vm4, %v6273_v45  ;;  %5948 = vmatmul.mubr.msk.f32.vlgmr.msra.gmra.mxu0 %vm932_vm4, %v6274_v43 }
 0x71f   : > { %5979 = vmatprep.mubr.msk.f32.mxu1 %vm6344_vm2, %v6343_v2  ;;  %5950 = vmatprep.mubr.msk.f32.mxu0 %vm6344_vm2, %v6343_v2 }
 0x720   : > { %5991 = vmatprep.subr.mxu0 %v6343_v2  ;;  %6010 = vmatprep.subr.mxu1 %v6343_v2 }
 0x721   : > { %5992 = vmatpush3.msra.mxu0 %v6275_v18  ;;  %6011 = vmatpush3.msra.mxu1 %v6276_v44 }
 0x722   : > { %5980 = vmatmul.mubr.msk.f32.gmra.mxu1 %vm932_vm4, %v6277_v46  ;;  %5951 = vmatmul.mubr.msk.f32.gmra.mxu0 %vm932_vm4, %v6278_v48 }
 0x723   : > { %5982 = vmatprep.mubr.msk.f32.mxu1 %vm6344_vm2, %v6343_v2  ;;  %5953 = vmatprep.mubr.msk.f32.mxu0 %vm6344_vm2, %v6343_v2 }
 0x724   : > { %5993 = vmatprep.subr.mxu0 %v6343_v2  ;;  %6012 = vmatprep.subr.mxu1 %v6343_v2 }
 0x725   : > { %5994 = vmatpush3.msra.mxu0 %v6279_v49  ;;  %6013 = vmatpush3.msra.mxu1 %v6280_v50 }
 0x726   : > { %5983 = vmatmul.mubr.msk.f32.gmra.mxu1 %vm932_vm4, %v6281_v47  ;;  %5954 = vmatmul.mubr.msk.f32.gmra.mxu0 %vm932_vm4, %v6282_v63 }
 0x727   : > { %5985 = vmatprep.mubr.msk.f32.mxu1 %vm6344_vm2, %v6343_v2  ;;  %5956 = vmatprep.mubr.msk.f32.mxu0 %vm6344_vm2, %v6343_v2 }
 0x728   : > { %6029 = vmatprep.subr.mxu0 %v6343_v2  ;;  %6058 = vmatprep.subr.mxu1 %v6343_v2 }
 0x72a   : > { %5986 = vmatmul.mubr.msk.f32.gmra.mxu1 %vm932_vm4, %v6283_v52  ;;  %5957 = vmatmul.mubr.msk.f32.gmra.mxu0 %vm932_vm4, %v6284_v53  ;;  %v6300_v53 = vld [vmem:[%s7939_s4 + $0x38] sm:$0xff] }
 0x72b   : > { %5988 = vmatprep.mubr.msk.f32.mxu1 %vm6344_vm2, %v6343_v2  ;;  %5959 = vmatprep.mubr.msk.f32.mxu0 %vm6344_vm2, %v6343_v2 }
 0x72e   : > { %5989 = vmatmul.mubr.msk.f32.gmra.mxu1 %vm932_vm4, %v6285_v54  ;;  %5960 = vmatmul.mubr.msk.f32.gmra.mxu0 %vm932_vm4, %v6286_v55  ;;  %v6301_v55 = vld [vmem:[%s7939_s4 + $0x30] sm:$0xff] }
 0x72f   : > { %5995 = vmatprep.mubr.msk.f32.mxu0 %vm6344_vm2, %v6343_v2  ;;  %6014 = vmatprep.mubr.msk.f32.mxu1 %vm6344_vm2, %v6343_v2 }
 0x7de   : > { %v3251_v30 = vpop.f32.mrf.mxu1  ;;  %v3161_v56 = vpop.f32.mrf.mxu0 }
 0x7df   : > { %5996 = vmatmul.mubr.msk.f32.vlgmr.msra.gmra.mxu0 %vm1147_vm5, %v3251_v30  ;;  %6015 = vmatmul.mubr.msk.f32.vlgmr.msra.gmra.mxu1 %vm1147_vm5, %v3161_v56 }
 0x7e0   : > { %6030 = vmatpush3.msk.msra.mxu0 %vm948_vm3, %v7449_v15  ;;  %v5978_v60 = vpop.f32.mrf.mxu1  ;;  %5998 = vmatprep.mubr.msk.f32.mxu0 %vm6344_vm2, %v6343_v2  ;;  %v5949_v61 = vpop.f32.mrf.mxu0 }
 0x7e1   : > { %6031 = vmatprep.subr.mxu0 %v6343_v2  ;;  %6017 = vmatprep.mubr.msk.f32.mxu1 %vm6344_vm2, %v6343_v2 }
 0x7e2   : > { %6032 = vmatpush3.msra.mxu0 %v7447_v24  ;;  %v3256_v0 = vpop.f32.mrf.mxu1  ;;  %v3166_v1 = vpop.f32.mrf.mxu0  ;;  %6059 = vmatpush3.msra.mxu1 %v6287_v5 }
 0x7e3   : > { %6033 = vmatprep.subr.mxu0 %v6343_v2  ;;  %5999 = vmatmul.mubr.msk.f32.gmra.mxu0 %vm1147_vm5, %v3256_v0 }
 0x7e4   : > { %6034 = vmatpush3.msra.mxu0 %v7444_v35  ;;  %v5981_v6 = vpop.f32.mrf.mxu1  ;;  %6001 = vmatprep.mubr.msk.f32.mxu0 %vm6344_vm2, %v6343_v2  ;;  %v5952_v19 = vpop.f32.mrf.mxu0 }
 0x7e5   : > { %6035 = vmatprep.subr.mxu0 %v6343_v2  ;;  %6018 = vmatmul.mubr.msk.f32.gmra.mxu1 %vm1147_vm5, %v3166_v1 }
 0x7e6   : > { %6036 = vmatpush3.msra.mxu0 %v7435_v20  ;;  %v3261_v7 = vpop.f32.mrf.mxu1  ;;  %v3171_v8 = vpop.f32.mrf.mxu0  ;;  %6020 = vmatprep.mubr.msk.f32.mxu1 %vm6344_vm2, %v6343_v2 }
 0x7e7   : > { %6037 = vmatprep.subr.mxu0 %v6343_v2  ;;  %6002 = vmatmul.mubr.msk.f32.gmra.mxu0 %vm1147_vm5, %v3261_v7 }
 0x7e8   : > { %6038 = vmatpush3.msra.mxu0 %v7429_v57  ;;  %v5984_v9 = vpop.f32.mrf.mxu1  ;;  %6004 = vmatprep.mubr.msk.f32.mxu0 %vm6344_vm2, %v6343_v2  ;;  %v5955_v10 = vpop.f32.mrf.mxu0 }
 0x7e9   : > { %6039 = vmatprep.subr.mxu0 %v6343_v2  ;;  %6021 = vmatmul.mubr.msk.f32.gmra.mxu1 %vm1147_vm5, %v3171_v8 }
 0x7ea   : > { %6040 = vmatpush3.msra.mxu0 %v7419_v51  ;;  %v3266_v32 = vpop.f32.mrf.mxu1  ;;  %v3176_v4 = vpop.f32.mrf.mxu0  ;;  %6023 = vmatprep.mubr.msk.f32.mxu1 %vm6344_vm2, %v6343_v2 }
 0x7eb   : > { %6041 = vmatprep.subr.mxu0 %v6343_v2  ;;  %6005 = vmatmul.mubr.msk.f32.gmra.mxu0 %vm1147_vm5, %v3266_v32 }
 0x7ec   : > { %6042 = vmatpush3.msra.mxu0 %v7413_v41  ;;  %v5987_v12 = vpop.f32.mrf.mxu1  ;;  %6007 = vmatprep.mubr.msk.f32.mxu0 %vm6344_vm2, %v6343_v2  ;;  %v5958_v14 = vpop.f32.mrf.mxu0 }
 0x7ed   : > { %6024 = vmatmul.mubr.msk.f32.gmra.mxu1 %vm1147_vm5, %v3176_v4  ;;  %6077 = vmatprep.subr.mxu0 %v6343_v2 }
 0x7ee   : > { %v3271_v62 = vpop.f32.mrf.mxu1  ;;  %v3181_v16 = vpop.f32.mrf.mxu0  ;;  %6026 = vmatprep.mubr.msk.f32.mxu1 %vm6344_vm2, %v6343_v2  ;;  %6060 = vmatprep.subr.mxu1 %v6343_v2 }
 0x7ef   : > { %6008 = vmatmul.mubr.msk.f32.gmra.mxu0 %vm1147_vm5, %v3271_v62  ;;  %6061 = vmatpush3.msra.mxu1 %v6288_v21  ;;  %v6302_v62 = vld [vmem:[%s7941_s6 + $0x20] sm:$0xff] }
 0x7f0   : > { %v5990_v22 = vpop.f32.mrf.mxu1  ;;  %6043 = vmatprep.mubr.msk.f32.mxu0 %vm6344_vm2, %v6343_v2  ;;  %v5961_v59 = vpop.f32.mrf.mxu0  ;;  %6106 = vmatprep.subr.mxu1 %v6343_v2 }
 0x7f1   : > { %6027 = vmatmul.mubr.msk.f32.gmra.mxu1 %vm1147_vm5, %v3181_v16 }
 0x7f2   : > { %6062 = vmatprep.mubr.msk.f32.mxu1 %vm6344_vm2, %v6343_v2 }
 0x7f3   : > { %6044 = vmatmul.mubr.msk.f32.vlgmr.msra.gmra.mxu0 %vm932_vm4, %v6289_v25 }
 0x7f4   : > { %6078 = vmatpush3.msk.msra.mxu0 %vm948_vm3, %v7449_v15  ;;  %6046 = vmatprep.mubr.msk.f32.mxu0 %vm6344_vm2, %v6343_v2 }
 0x7f5   : > { %6079 = vmatprep.subr.mxu0 %v6343_v2 }
 0x7f6   : > { %6080 = vmatpush3.msra.mxu0 %v7447_v24 }
 0x7f7   : > { %6081 = vmatprep.subr.mxu0 %v6343_v2  ;;  %6047 = vmatmul.mubr.msk.f32.gmra.mxu0 %vm932_vm4, %v6290_v17 }
 0x7f8   : > { %6082 = vmatpush3.msra.mxu0 %v7444_v35  ;;  %6049 = vmatprep.mubr.msk.f32.mxu0 %vm6344_vm2, %v6343_v2 }
 0x7f9   : > { %6083 = vmatprep.subr.mxu0 %v6343_v2 }
 0x7fa   : > { %6084 = vmatpush3.msra.mxu0 %v7435_v20  ;;  %v6292_v20 = vld [vmem:[%s7938_s3 + $0x68] sm:$0xff] }
 0x7fb   : > { %6085 = vmatprep.subr.mxu0 %v6343_v2  ;;  %6050 = vmatmul.mubr.msk.f32.gmra.mxu0 %vm932_vm4, %v6291_v36 }
 0x7fc   : > { %6086 = vmatpush3.msra.mxu0 %v7429_v57  ;;  %6052 = vmatprep.mubr.msk.f32.mxu0 %vm6344_vm2, %v6343_v2  ;;  %v6293_v57 = vld [vmem:[%s7938_s3 + $0x70] sm:$0xf] }
 0x7fd   : > { %6087 = vmatprep.subr.mxu0 %v6343_v2 }
 0x7fe   : > { %6088 = vmatpush3.msra.mxu0 %v7419_v51  ;;  %v6294_v51 = vld [vmem:[%s7938_s3 + $0x78] sm:$0xff] }
 0x7ff   : > { %6089 = vmatprep.subr.mxu0 %v6343_v2  ;;  %6053 = vmatmul.mubr.msk.f32.gmra.mxu0 %vm932_vm4, %v6292_v20 }
 0x800   : > { %6090 = vmatpush3.msra.mxu0 %v7413_v41  ;;  %6055 = vmatprep.mubr.msk.f32.mxu0 %vm6344_vm2, %v6343_v2  ;;  %v6295_v41 = vld [vmem:[%s7938_s3 + $0x80] sm:$0xff] }
 0x803   : > { %6056 = vmatmul.mubr.msk.f32.gmra.mxu0 %vm932_vm4, %v6293_v57 }
 0x804   : > { %6091 = vmatprep.mubr.msk.f32.mxu0 %vm6344_vm2, %v6343_v2 }
 0x807   : > { %6092 = vmatmul.mubr.msk.f32.vlgmr.msra.gmra.mxu0 %vm932_vm4, %v6294_v51 }
 0x808   : > { %6094 = vmatprep.mubr.msk.f32.mxu0 %vm6344_vm2, %v6343_v2 }
 0x80b   : > { %6095 = vmatmul.mubr.msk.f32.gmra.mxu0 %vm932_vm4, %v6295_v41 }
 0x80c   : > { %6097 = vmatprep.mubr.msk.f32.mxu0 %vm6344_vm2, %v6343_v2 }
 0x80f   : > { %6098 = vmatmul.mubr.msk.f32.gmra.mxu0 %vm932_vm4, %v6296_v28 }
 0x810   : > { %6100 = vmatprep.mubr.msk.f32.mxu0 %vm6344_vm2, %v6343_v2 }
 0x813   : > { %6101 = vmatmul.mubr.msk.f32.gmra.mxu0 %vm932_vm4, %v6297_v3 }
 0x814   : > { %6103 = vmatprep.mubr.msk.f32.mxu0 %vm6344_vm2, %v6343_v2 }
 0x817   : > { %6104 = vmatmul.mubr.msk.f32.gmra.mxu0 %vm932_vm4, %v6298_v31 }
 0x818   : > { %6135 = vmatprep.mubr.msk.f32.mxu0 %vm1804_vm6, %v6299_v33 }
 0x89f   : > { %v3356_v23 = vpop.f32.mrf.mxu0  ;;  %v3461_v35 = vpop.f32.mrf.mxu1 }
 0x8a0   : > { %v7686_v13 = vadd.f32 %v3461_v35, %v3356_v23 }
 0x8a1   : > { %v5997_v37 = vpop.f32.mrf.mxu0  ;;  %v6016_v29 = vpop.f32.mrf.mxu1 }
 0x8a3   : > { %v3361_v38 = vpop.f32.mrf.mxu0 }
 0x8a5   : > { %v6000_v58 = vpop.f32.mrf.mxu0  ;;  %v3466_v39 = vpop.f32.mrf.mxu1 }
 0x8a6   : > { %v7688_v40 = vadd.f32 %v3466_v39, %v3361_v38 }
 0x8a7   : > { %v3366_v27 = vpop.f32.mrf.mxu0  ;;  %v6019_v34 = vpop.f32.mrf.mxu1 }
 0x8a9   : > { %v6003_v24 = vpop.f32.mrf.mxu0  ;;  %v3471_v26 = vpop.f32.mrf.mxu1 }
 0x8aa   : > { %v7690_v11 = vadd.f32 %v3471_v26, %v3366_v27 }
 0x8ab   : > { %v3371_v42 = vpop.f32.mrf.mxu0  ;;  %v6022_v15 = vpop.f32.mrf.mxu1 }
 0x8ad   : > { %v6006_v45 = vpop.f32.mrf.mxu0  ;;  %v3476_v43 = vpop.f32.mrf.mxu1 }
 0x8ae   : > { %v7692_v18 = vadd.f32 %v3476_v43, %v3371_v42  ;;  %v6303_v45 = vld [vmem:[%s7940_s5] ss:$0 sm:$0xff] }
 0x8af   : > { %v3376_v44 = vpop.f32.mrf.mxu0  ;;  %v6025_v46 = vpop.f32.mrf.mxu1 }
 0x8b1   : > { %v6009_v48 = vpop.f32.mrf.mxu0  ;;  %v3481_v49 = vpop.f32.mrf.mxu1 }
 0x8b2   : > { %v7694_v50 = vadd.f32 %v3481_v49, %v3376_v44 }
 0x8b3   : > { %v3551_v47 = vpop.f32.mrf.mxu0  ;;  %v6028_v63 = vpop.f32.mrf.mxu1 }
 0x8b4   : > { %6063 = vmatmul.mubr.msk.f32.vlgmr.msra.gmra.mxu1 %vm1147_vm5, %v3551_v47  ;;  %v6304_v63 = vld [vmem:[%s7941_s6 + $0x8] sm:$0xff] }
 0x8b5   : > { %v6045_v52 = vpop.f32.mrf.mxu0  ;;  %6065 = vmatprep.mubr.msk.f32.mxu1 %vm6344_vm2, %v6343_v2  ;;  %6107 = vmatpush3.msra.mxu1 %v6300_v53  ;;  %v6306_v53 = vld [vmem:[%s7942_s7 + $0x38] sm:$0xff] }
 0x8b6   : > { %6108 = vmatprep.subr.mxu1 %v6343_v2  ;;  %v6305_v52 = vld [vmem:[%s7941_s6 + $0x28] sm:$0xff] }
 0x8b7   : > { %v3556_v54 = vpop.f32.mrf.mxu0  ;;  %6109 = vmatpush3.msra.mxu1 %v6301_v55  ;;  %v6308_v55 = vld [vmem:[%s7941_s6 + $0x10] sm:$0xff] }
 0x8b8   : > { %6066 = vmatmul.mubr.msk.f32.gmra.mxu1 %vm1147_vm5, %v3556_v54  ;;  %v6307_v54 = vld [vmem:[%s7941_s6 + $0x30] sm:$0xff] }
 0x8b9   : > { %v6048_v30 = vpop.f32.mrf.mxu0  ;;  %6068 = vmatprep.mubr.msk.f32.mxu1 %vm6344_vm2, %v6343_v2 }
 0x8ba   : > { %v6309_v30 = vld [vmem:[%s7942_s7 + $0x30] sm:$0xff] }
 0x8bb   : > { %v3561_v56 = vpop.f32.mrf.mxu0 }
 0x8bc   : > { %6069 = vmatmul.mubr.msk.f32.gmra.mxu1 %vm1147_vm5, %v3561_v56  ;;  %v6310_v56 = vld [vmem:[%s7942_s7 + $0x18] sm:$0xff] }
 0x8bd   : > { %v6051_v60 = vpop.f32.mrf.mxu0  ;;  %6071 = vmatprep.mubr.msk.f32.mxu1 %vm6344_vm2, %v6343_v2 }
 0x8be   : > { %v6311_v60 = vld [vmem:[%s7941_s6 + $0x38] sm:$0x1] }
 0x8bf   : > { %v3566_v61 = vpop.f32.mrf.mxu0 }
 0x8c0   : > { %6072 = vmatmul.mubr.msk.f32.gmra.mxu1 %vm1147_vm5, %v3566_v61  ;;  %v6312_v61 = vld [vmem:[%s7942_s7 + $0x28] sm:$0xff] }
 0x8c1   : > { %v6054_v0 = vpop.f32.mrf.mxu0  ;;  %6074 = vmatprep.mubr.msk.f32.mxu1 %vm6344_vm2, %v6343_v2 }
 0x8c2   : > { %v6313_v0 = vld [vmem:[%s7941_s6 + $0x18] sm:$0x1] }
 0x8c3   : > { %v3571_v1 = vpop.f32.mrf.mxu0 }
 0x8c4   : > { %6075 = vmatmul.mubr.msk.f32.gmra.mxu1 %vm1147_vm5, %v3571_v1  ;;  %v6314_v1 = vld [vmem:[%s7942_s7 + $0x20] sm:$0xff] }
 0x8c5   : > { %v6057_v5 = vpop.f32.mrf.mxu0  ;;  %6110 = vmatprep.mubr.msk.f32.mxu1 %vm6344_vm2, %v6343_v2 }
 0x8c6   : > { %v6315_v5 = vld [vmem:[%s7942_s7 + $0x10] sm:$0xff] }
 0x8c7   : > { %v3751_v6 = vpop.f32.mrf.mxu0 }
 0x8c8   : > { %6111 = vmatmul.mubr.msk.f32.vlgmr.msra.gmra.mxu1 %vm1147_vm5, %v3751_v6  ;;  %v6316_v6 = vld [vmem:[%s7942_s7 + $0x8] sm:$0xff] }
 0x8c9   : > { %v6093_v19 = vpop.f32.mrf.mxu0  ;;  %6113 = vmatprep.mubr.msk.f32.mxu1 %vm6344_vm2, %v6343_v2 }
 0x8ca   : > { %v6317_v19 = vld [vmem:[%s7942_s7] sm:$0xff] }
 0x8cb   : > { %v3756_v7 = vpop.f32.mrf.mxu0 }
 0x8cc   : > { %6114 = vmatmul.mubr.msk.f32.gmra.mxu1 %vm1147_vm5, %v3756_v7  ;;  %v6318_v7 = vld [vmem:[%s7942_s7 + $0x58] sm:$0xff] }
 0x8cd   : > { %v6096_v8 = vpop.f32.mrf.mxu0  ;;  %6116 = vmatprep.mubr.msk.f32.mxu1 %vm6344_vm2, %v6343_v2 }
 0x8cf   : > { %v3761_v9 = vpop.f32.mrf.mxu0 }
 0x8d0   : > { %6117 = vmatmul.mubr.msk.f32.gmra.mxu1 %vm1147_vm5, %v3761_v9 }
 0x8d1   : > { %v6099_v10 = vpop.f32.mrf.mxu0  ;;  %6119 = vmatprep.mubr.msk.f32.mxu1 %vm6344_vm2, %v6343_v2 }
 0x8d3   : > { %v3766_v32 = vpop.f32.mrf.mxu0 }
 0x8d4   : > { %6120 = vmatmul.mubr.msk.f32.gmra.mxu1 %vm1147_vm5, %v3766_v32 }
 0x8d5   : > { %v6102_v4 = vpop.f32.mrf.mxu0  ;;  %6122 = vmatprep.mubr.msk.f32.mxu1 %vm6344_vm2, %v6343_v2 }
 0x8d7   : > { %v3771_v12 = vpop.f32.mrf.mxu0 }
 0x8d8   : > { %6123 = vmatmul.mubr.msk.f32.gmra.mxu1 %vm1147_vm5, %v3771_v12  ;;  %v6319_v12 = vld [vmem:[%s7942_s7 + $0x50] sm:$0xff] }
 0x8d9   : > { %v6105_v14 = vpop.f32.mrf.mxu0  ;;  %6151 = vmatprep.mubr.msk.f32.mxu1 %vm1804_vm6, %v6302_v62  ;;  %v6320_v62 = vld [vmem:[%s7942_s7 + $0x48] sm:$0xff] }
 0x974   : > { %v3656_v16 = vpop.f32.mrf.mxu1 }
 0x975   : > { %v3680_v42 = vadd.f32 %v3656_v16, %v7686_v13 }
 0x976   : > { %v6064_v21 = vpop.f32.mrf.mxu1 }
 0x977   : > { %v6321_v21 = vld [vmem:[%s7942_s7 + $0x40] sm:$0xff] }
 0x978   : > { %v3661_v22 = vpop.f32.mrf.mxu1 }
 0x979   : > { %v3681_v27 = vadd.f32 %v3661_v22, %v7688_v40 }
 0x97a   : > { %v6067_v59 = vpop.f32.mrf.mxu1 }
 0x97b   : > { %v6322_v59 = vld [vmem:[%s7941_s6 + $0x40] sm:$0xff] }
 0x97c   : > { %v3666_v25 = vpop.f32.mrf.mxu1 }
 0x97d   : > { %v3682_v29 = vadd.f32 %v3666_v25, %v7690_v11  ;;  %v6323_v25 = vld [vmem:[%s7941_s6 + $0x48] sm:$0xff] }
 0x97e   : > { %v6070_v17 = vpop.f32.mrf.mxu1 }
 0x97f   : > { %v6324_v17 = vld [vmem:[%s7941_s6 + $0x50] sm:$0xff] }
 0x980   : > { %v3671_v36 = vpop.f32.mrf.mxu1 }
 0x981   : > { %v3683_v35 = vadd.f32 %v3671_v36, %v7692_v18  ;;  %v6325_v36 = vld [vmem:[%s7942_s7 + $0x78] sm:$0xff] }
 0x982   : > { %v6073_v20 = vpop.f32.mrf.mxu1 }
 0x983   : > { %v6326_v20 = vld [vmem:[%s7941_s6 + $0x58] sm:$0x1] }
 0x984   : > { %v3676_v57 = vpop.f32.mrf.mxu1 }
 0x985   : > { %v3684_v38 = vadd.f32 %v3676_v57, %v7694_v50  ;;  %v6327_v57 = vld [vmem:[%s7942_s7 + $0x70] sm:$0xff] }
 0x986   : > { %v6076_v2 = vpop.f32.mrf.mxu1 }
 0x987   : > { %v6328_v2 = vld [vmem:[%s7942_s7 + $0x68] sm:$0xff] }
 0x988   : > { %v3856_v51 = vpop.f32.mrf.mxu1 }
 0x989   : > { %v3880_v44 = vadd.f32 %v3856_v51, %v3680_v42  ;;  %v6329_v51 = vld [vmem:[%s7942_s7 + $0x60] sm:$0xff]  ;;  %v6332_v42 = vld [vmem:[%s7941_s6 + $0x70] sm:$0xff] }
 0x98a   : > { %v6112_v41 = vpop.f32.mrf.mxu1 }
 0x98b   : > { %v3885_v13 = vadd.f32 %v6303_v45, %v3880_v44 }
 0x98c   : > { %v3861_v28 = vpop.f32.mrf.mxu1 }
 0x98d   : > { %v3881_v15 = vadd.f32 %v3861_v28, %v3681_v27  ;;  %v7767_v47 = vmax.f32 %v3885_v13, 0.0 }
 0x98e   : > { %v6115_v3 = vpop.f32.mrf.mxu1 }
 0x98f   : > { %v3886_v48 = vadd.f32 %v6303_v45, %v3881_v15  ;;  %v6333_v15 = vld [vmem:[%s7941_s6 + $0x78] sm:$0x1] }
 0x990   : > { %v3866_v31 = vpop.f32.mrf.mxu1 }
 0x991   : > { %v3882_v34 = vadd.f32 %v3866_v31, %v3682_v29  ;;  %v7761_v50 = vmax.f32 %v3886_v48, 0.0 }
 0x992   : > { %v6118_v33 = vpop.f32.mrf.mxu1 }
 0x993   : > { %v3887_v11 = vadd.f32 %v6303_v45, %v3882_v34 }
 0x994   : > { %v3871_v23 = vpop.f32.mrf.mxu1 }
 0x995   : > { %v3883_v58 = vadd.f32 %v3871_v23, %v3683_v35  ;;  %v7755_v40 = vmax.f32 %v3887_v11, 0.0 }
 0x996   : > { %v6121_v37 = vpop.f32.mrf.mxu1 }
 0x997   : > { %v3888_v43 = vadd.f32 %v6303_v45, %v3883_v58 }
 0x998   : > { %v3876_v39 = vpop.f32.mrf.mxu1 }
 0x999   : > { %v3884_v24 = vadd.f32 %v3876_v39, %v3684_v38  ;;  %v7745_v49 = vmax.f32 %v3888_v43, 0.0 }
 0x99a   : > { %v6124_v26 = vpop.f32.mrf.mxu1 }
 0x99b   : > { %v3889_v18 = vadd.f32 %v6303_v45, %v3884_v24  ;;  %v6330_v24 = vld [vmem:[%s7941_s6 + $0x60] sm:$0xff]  ;;  %v6331_v26 = vld [vmem:[%s7941_s6 + $0x68] sm:$0xff] }
 0x99d   : > { %v7743_v46 = vmax.f32 %v3889_v18, 0.0 }
 0x99f   : > { %6125 = vmatprep.subr.msk.mxu0 %vm1817_vm7, %v7743_v46  ;;  %6141 = vmatprep.subr.msk.mxu1 %vm1817_vm7, %v7743_v46 }
 0x9a0   : > { %6126 = vmatpush3.msk.msra.mxu0 %vm1817_vm7, %v7743_v46  ;;  %6142 = vmatpush3.msk.msra.mxu1 %vm1817_vm7, %v7743_v46 }
 0x9a1   : > { %6127 = vmatprep.subr.mxu0 %v7745_v49  ;;  %6143 = vmatprep.subr.mxu1 %v7745_v49 }
 0x9a2   : > { %6128 = vmatpush3.msra.mxu0 %v7745_v49  ;;  %6144 = vmatpush3.msra.mxu1 %v7745_v49 }
 0x9a3   : > { %6129 = vmatprep.subr.mxu0 %v7755_v40  ;;  %6145 = vmatprep.subr.mxu1 %v7755_v40 }
 0x9a4   : > { %6130 = vmatpush3.msra.mxu0 %v7755_v40  ;;  %6146 = vmatpush3.msra.mxu1 %v7755_v40 }
 0x9a5   : > { %6131 = vmatprep.subr.mxu0 %v7761_v50  ;;  %6147 = vmatprep.subr.mxu1 %v7761_v50 }
 0x9a6   : > { %6132 = vmatpush3.msra.mxu0 %v7761_v50  ;;  %6148 = vmatpush3.msra.mxu1 %v7761_v50 }
 0x9a7   : > { %6133 = vmatprep.subr.mxu0 %v7767_v47  ;;  %6149 = vmatprep.subr.mxu1 %v7767_v47 }
 0x9a8   : > { %6134 = vmatpush3.msra.mxu0 %v7767_v47  ;;  %6150 = vmatpush3.msra.mxu1 %v7767_v47 }
 0x9a9   : > { %6136 = vmatmul.mubr.msk.f32.vlgmr.msra.gmra.mxu0 %vm1804_vm6, %v6304_v63  ;;  %6152 = vmatmul.mubr.msk.f32.vlgmr.msra.gmra.mxu1 %vm1804_vm6, %v6305_v52 }
 0x9aa   : > { %6157 = vmatprep.subr.mxu0 %v6306_v53  ;;  %6154 = vmatprep.mubr.msk.f32.mxu1 %vm1804_vm6, %v6307_v54 }
 0x9ab   : > { %6158 = vmatpush3.msra.mxu0 %v6306_v53  ;;  %6138 = vmatprep.mubr.msk.f32.mxu0 %vm1804_vm6, %v6308_v55 }
 0x9ac   : > { %6159 = vmatprep.subr.mxu0 %v6309_v30  ;;  %6171 = vmatprep.subr.mxu1 %v6310_v56 }
 0x9ad   : > { %6160 = vmatpush3.msra.mxu0 %v6309_v30  ;;  %6155 = vmatmul.mubr.msk.f32.gmra.mxu1 %vm1804_vm6, %v6311_v60  ;;  %v6334_v30 = vld [vmem:[%s7943_s8] ss:$0 sm:$0xff] }
 0x9ae   : > { %6161 = vmatprep.subr.mxu0 %v6312_v61  ;;  %6139 = vmatmul.mubr.msk.f32.gmra.mxu0 %vm1804_vm6, %v6313_v0 }
 0x9af   : > { %6162 = vmatpush3.msra.mxu0 %v6312_v61  ;;  %6172 = vmatpush3.msra.mxu1 %v6310_v56 }
 0x9b0   : > { %6163 = vmatprep.subr.mxu0 %v6314_v1  ;;  %6173 = vmatprep.subr.mxu1 %v6315_v5 }
 0x9b1   : > { %6164 = vmatpush3.msra.mxu0 %v6314_v1  ;;  %6174 = vmatpush3.msra.mxu1 %v6315_v5 }
 0x9b2   : > { %6185 = vmatprep.subr.msk.mxu0 %vm1817_vm7, %v7743_v46  ;;  %6175 = vmatprep.subr.mxu1 %v6316_v6 }
 0x9b3   : > { %6176 = vmatpush3.msra.mxu1 %v6316_v6 }
 0x9b4   : > { %6177 = vmatprep.subr.mxu1 %v6317_v19 }
 0x9b5   : > { %6178 = vmatpush3.msra.mxu1 %v6317_v19 }
 0x9b6   : > { %6201 = vmatprep.subr.mxu1 %v6318_v7 }
 0xa69   : > { %v6137_v8 = vpop.f32.mrf.mxu0  ;;  %v6153_v9 = vpop.f32.mrf.mxu1 }
 0xa6b   : > { %v3964_v10 = vpop.f32.mrf.mxu0  ;;  %v4049_v32 = vpop.f32.mrf.mxu1 }
 0xa6c   : > { %6165 = vmatprep.mubr.msk.f32.mxu0 %vm2003_vm8, %v4049_v32  ;;  %6179 = vmatprep.mubr.msk.f32.mxu1 %vm2003_vm8, %v3964_v10 }
 0xa6d   : > { %6166 = vmatmul.mubr.msk.f32.vlgmr.msra.gmra.mxu0 %vm2003_vm8, %v6153_v9  ;;  %6180 = vmatmul.mubr.msk.f32.vlgmr.msra.gmra.mxu1 %vm2003_vm8, %v6137_v8  ;;  %v6156_v4 = vpop.f32.mrf.mxu1 }
 0xa6e   : > { %6186 = vmatpush3.msk.msra.mxu0 %vm1817_vm7, %v7743_v46  ;;  %6202 = vmatpush3.msra.mxu1 %v6318_v7  ;;  %v6140_v16 = vpop.f32.mrf.mxu0 }
 0xa6f   : > { %6187 = vmatprep.subr.mxu0 %v7745_v49  ;;  %6203 = vmatprep.subr.mxu1 %v6319_v12  ;;  %v4059_v14 = vpop.f32.mrf.mxu1 }
 0xa70   : > { %6188 = vmatpush3.msra.mxu0 %v7745_v49  ;;  %6204 = vmatpush3.msra.mxu1 %v6319_v12  ;;  %v3974_v22 = vpop.f32.mrf.mxu0 }
 0xa71   : > { %6189 = vmatprep.subr.mxu0 %v7755_v40  ;;  %6205 = vmatprep.subr.mxu1 %v6320_v62 }
 0xa72   : > { %6168 = vmatprep.mubr.msk.f32.mxu0 %vm2003_vm8, %v4059_v14  ;;  %6190 = vmatpush3.msra.mxu0 %v7755_v40 }
 0xa73   : > { %6206 = vmatpush3.msra.mxu1 %v6320_v62  ;;  %6169 = vmatmul.mubr.msk.f32.gmra.mxu0 %vm2003_vm8, %v6156_v4 }
 0xa74   : > { %6191 = vmatprep.subr.mxu0 %v7761_v50  ;;  %6207 = vmatprep.subr.mxu1 %v6321_v21 }
 0xa75   : > { %6192 = vmatpush3.msra.mxu0 %v7761_v50  ;;  %6208 = vmatpush3.msra.mxu1 %v6321_v21 }
 0xa76   : > { %6193 = vmatprep.subr.mxu0 %v7767_v47  ;;  %6215 = vmatprep.subr.msk.mxu1 %vm1817_vm7, %v7743_v46 }
 0xa77   : > { %6194 = vmatpush3.msra.mxu0 %v7767_v47  ;;  %6195 = vmatprep.mubr.msk.f32.mxu0 %vm1804_vm6, %v6322_v59 }
 0xa78   : > { %6196 = vmatmul.mubr.msk.f32.vlgmr.msra.gmra.mxu0 %vm1804_vm6, %v6323_v25  ;;  %6182 = vmatprep.mubr.msk.f32.mxu1 %vm2003_vm8, %v3974_v22 }
 0xa79   : > { %6198 = vmatprep.mubr.msk.f32.mxu0 %vm1804_vm6, %v6324_v17  ;;  %6183 = vmatmul.mubr.msk.f32.gmra.mxu1 %vm2003_vm8, %v6140_v16 }
 0xa7a   : > { %6231 = vmatprep.subr.mxu0 %v6325_v36 }
 0xa7b   : > { %6232 = vmatpush3.msra.mxu0 %v6325_v36 }
 0xa7c   : > { %6199 = vmatmul.mubr.msk.f32.gmra.mxu0 %vm1804_vm6, %v6326_v20  ;;  %6233 = vmatprep.subr.mxu0 %v6327_v57 }
 0xa7d   : > { %6234 = vmatpush3.msra.mxu0 %v6327_v57 }
 0xa7e   : > { %6235 = vmatprep.subr.mxu0 %v6328_v2 }
 0xa7f   : > { %6236 = vmatpush3.msra.mxu0 %v6328_v2 }
 0xa80   : > { %6237 = vmatprep.subr.mxu0 %v6329_v51 }
 0xa81   : > { %6238 = vmatpush3.msra.mxu0 %v6329_v51 }
 0xb2d   : > { %v6167_v41 = vpop.f32.mrf.mxu0  ;;  %v6181_v28 = vpop.f32.mrf.mxu1 }
 0xb2e   : > { %v4249_v3 = vadd.f32 %v6181_v28, %v6167_v41 }
 0xb2f   : > { %v4146_v31 = vpop.f32.mrf.mxu0  ;;  %v4243_v33 = vpop.f32.mrf.mxu1 }
 0xb30   : > { %v4244_v23 = vadd.f32 %v4243_v33, %v4146_v31 }
 0xb33   : > { %v6170_v35 = vpop.f32.mrf.mxu0 }
 0xb35   : > { %v4156_v37 = vpop.f32.mrf.mxu0 }
 0xb38   : > { %v6197_v29 = vpop.f32.mrf.mxu0 }
 0xb39   : > { %v6184_v38 = vpop.f32.mrf.mxu1 }
 0xb3a   : > { %v4328_v58 = vpop.f32.mrf.mxu0  ;;  %v4259_v39 = vadd.f32 %v6184_v38, %v6170_v35 }
 0xb3b   : > { %6209 = vmatprep.mubr.msk.f32.mxu1 %vm2003_vm8, %v4328_v58  ;;  %v4253_v45 = vpop.f32.mrf.mxu1 }
 0xb3c   : > { %v6200_v27 = vpop.f32.mrf.mxu0  ;;  %6210 = vmatmul.mubr.msk.f32.vlgmr.msra.gmra.mxu1 %vm2003_vm8, %v6197_v29  ;;  %v4254_v48 = vadd.f32 %v4253_v45, %v4156_v37 }
 0xb3d   : > { %6216 = vmatpush3.msk.msra.mxu1 %vm1817_vm7, %v7743_v46 }
 0xb3e   : > { %6217 = vmatprep.subr.mxu1 %v7745_v49  ;;  %v4338_v34 = vpop.f32.mrf.mxu0 }
 0xb3f   : > { %6218 = vmatpush3.msra.mxu1 %v7745_v49  ;;  %6212 = vmatprep.mubr.msk.f32.mxu1 %vm2003_vm8, %v4338_v34 }
 0xb40   : > { %6219 = vmatprep.subr.mxu1 %v7755_v40  ;;  %6213 = vmatmul.mubr.msk.f32.gmra.mxu1 %vm2003_vm8, %v6200_v27 }
 0xb41   : > { %6220 = vmatpush3.msra.mxu1 %v7755_v40  ;;  %6225 = vmatprep.mubr.msk.f32.mxu1 %vm1804_vm6, %v6330_v24 }
 0xb42   : > { %6221 = vmatprep.subr.mxu1 %v7761_v50 }
 0xb43   : > { %6222 = vmatpush3.msra.mxu1 %v7761_v50 }
 0xb44   : > { %6223 = vmatprep.subr.mxu1 %v7767_v47 }
 0xb45   : > { %6224 = vmatpush3.msra.mxu1 %v7767_v47 }
 0xb46   : > { %6226 = vmatmul.mubr.msk.f32.vlgmr.msra.gmra.mxu1 %vm1804_vm6, %v6331_v26 }
 0xb47   : > { %6228 = vmatprep.mubr.msk.f32.mxu1 %vm1804_vm6, %v6332_v42 }
 0xb4a   : > { %6229 = vmatmul.mubr.msk.f32.gmra.mxu1 %vm1804_vm6, %v6333_v15 }
 0xbfc   : > { %v6211_v43 = vpop.f32.mrf.mxu1 }
 0xbfd   : > { %v4445_v18 = vadd.f32 %v6211_v43, %v4249_v3 }
 0xbfe   : > { %v4425_v44 = vpop.f32.mrf.mxu1 }
 0xbff   : > { %v4444_v11 = vadd.f32 %v4425_v44, %v4244_v23 }
 0xc00   : > { %v6214_v46 = vpop.f32.mrf.mxu1 }
 0xc01   : > { %v4447_v49 = vadd.f32 %v6214_v46, %v4259_v39 }
 0xc02   : > { %v4435_v13 = vpop.f32.mrf.mxu1 }
 0xc03   : > { %v4446_v40 = vadd.f32 %v4435_v13, %v4254_v48 }
 0xc06   : > { %v6227_v50 = vpop.f32.mrf.mxu1 }
 0xc08   : > { %v4514_v47 = vpop.f32.mrf.mxu1 }
 0xc09   : > { %6239 = vmatprep.mubr.msk.f32.mxu0 %vm2003_vm8, %v4514_v47 }
 0xc0a   : > { %v6230_v63 = vpop.f32.mrf.mxu1  ;;  %6240 = vmatmul.mubr.msk.f32.vlgmr.msra.gmra.mxu0 %vm2003_vm8, %v6227_v50 }
 0xc0c   : > { %v4524_v52 = vpop.f32.mrf.mxu1 }
 0xc0d   : > { %6242 = vmatprep.mubr.msk.f32.mxu0 %vm2003_vm8, %v4524_v52 }
 0xc0e   : > { %6243 = vmatmul.mubr.msk.f32.gmra.mxu0 %vm2003_vm8, %v6230_v63 }
 0xcca   : > { %v6241_v53 = vpop.f32.mrf.mxu0 }
 0xccb   : > { %v4631_v54 = vadd.f32 %v6241_v53, %v4445_v18 }
 0xccc   : > { %v4611_v55 = vpop.f32.mrf.mxu0 }
 0xccd   : > { %v4635_v56 = vadd.f32 %v6334_v30, %v4631_v54  ;;  %v4630_v60 = vadd.f32 %v4611_v55, %v4444_v11 }
 0xcce   : > { %v6244_v61 = vpop.f32.mrf.mxu0 }
 0xccf   : > { %v4639_v0 = vmax.f32 %v4635_v56, 0.0  ;;  %v4634_v1 = vadd.f32 %v6334_v30, %v4630_v60  ;;  %v4633_v5 = vadd.f32 %v6244_v61, %v4447_v49 }
 0xcd0   : > { %v4621_v6 = vpop.f32.mrf.mxu0 }
 0xcd1   : > { %5007 = vst.msk [vmem:[%s7377_s26 + $0x28] sm:$0xff] %vm2608_vm9, %v4639_v0  ;;  %v4638_v19 = vmax.f32 %v4634_v1, 0.0  ;;  %v4637_v7 = vadd.f32 %v6334_v30, %v4633_v5  ;;  %v4632_v8 = vadd.f32 %v4621_v6, %v4446_v40 }
 0xcd3   : > { %5006 = vst.msk [vmem:[%s7377_s26 + $0x20] sm:$0xff] %vm2608_vm9, %v4638_v19  ;;  %v4641_v9 = vmax.f32 %v4637_v7, 0.0  ;;  %v4636_v10 = vadd.f32 %v6334_v30, %v4632_v8 }
 0xcd5   : > { %5009 = vst.msk [vmem:[%s7377_s26 + $0x38] sm:$0x1] %vm2612_vm10, %v4641_v9  ;;  %v4640_v32 = vmax.f32 %v4636_v10, 0.0 }
 0xcd7   : > { %5008 = vst.msk [vmem:[%s7377_s26 + $0x30] sm:$0xff] %vm2608_vm9, %v4640_v32 }
 0xcd8 PF: > { %s19_s30 = sadd.s32 1, %s6341_s30  }
 0xcd9   : > { %p16_p4 = scmp.ge.s32.totalorder %s19_s30, 6  }
 0xcdb   :  { %18 = sbr.rel (!%p16_p4) target bundleno = 1 (0x1), region = 103 }

</bundles_post_ra>
